<compile_context>
chip_gen: v7x
topology: tpu7x:2x2x1
jax: 0.10.0
libtpu: 0.0.40
codegen_flags: <defaults>
</compile_context>

<pallas_src>
import functools

import jax
import jax.numpy as jnp
from jax.experimental import pallas as pl

MXU_DTYPE = jnp.bfloat16  # matmul operand dtype; accumulation stays f32


# ---------------------------------------------------------------------------
# Fused kernel: max-pool + LSTM1 -> (Linear1 folded) LSTM2 -> Linear2 + mean
# ---------------------------------------------------------------------------
def _gru_block_kernel(x_ref, w_ih1_ref, b1_ref, w_hh1_ref,
                      w2_ref, b2_ref, w_l2_ref, b_l2_ref, out_ref,
                      *, B, C, T, nh):
    # ---- hoisted spatial max-pool + LSTM-1 input projection (all T steps) --
    # Off the serial path: none of these depend on recurrent state.
    w_ih1 = w_ih1_ref[...]                               # (C, 4nh) bf16
    b1 = b1_ref[...]                                     # (1, 4nh) f32
    gx = []
    for t in range(T):                                   # static, fully unrolled
        slab = x_ref[:, :, t, :]                         # (B, C, H*W) f32
        pooled = jnp.max(slab, axis=-1)                  # (B, C)
        gx.append(jnp.dot(pooled.astype(MXU_DTYPE), w_ih1,
                          preferred_element_type=jnp.float32) + b1)  # (B, 4nh)

    w_hh1 = w_hh1_ref[...]                               # (nh, 4nh)  bf16
    w2 = w2_ref[...]                                     # (2nh, 4nh) bf16  [W_l1@W_ih2 ; W_hh2]
    b2 = b2_ref[...]                                     # (1, 4nh)   f32   b_l1@W_ih2 + b_lstm2

    def lstm_cell(gates, c_prev):
        # Gate layout along lanes: [ i | f | o | g ]  (3 sigmoids, 1 tanh).
        ifo = jax.nn.sigmoid(gates[:, :3 * nh])
        g = jnp.tanh(gates[:, 3 * nh:])
        i = ifo[:, :nh]
        f = ifo[:, nh:2 * nh]
        o = ifo[:, 2 * nh:]
        c = f * c_prev + i * g
        h = o * jnp.tanh(c)
        return h, c

    # ---- serial recurrence, state carried in vregs --------------------------
    zeros = jnp.zeros((B, nh), jnp.float32)
    h1, c1, h2, c2, acc = zeros, zeros, zeros, zeros, zeros
    for t in range(T):                                   # static, fully unrolled
        # LSTM 1 (x-projection + bias already folded into gx[t])
        gates1 = gx[t] + jnp.dot(h1.astype(MXU_DTYPE), w_hh1,
                                 preferred_element_type=jnp.float32)
        h1, c1 = lstm_cell(gates1, c1)

        # LSTM 2 with Linear-1 folded in: one fused gate matmul on [h1 | h2]
        hcat = jnp.concatenate([h1, h2], axis=-1)        # (B, 2nh)
        gates2 = jnp.dot(hcat.astype(MXU_DTYPE), w2,
                         preferred_element_type=jnp.float32) + b2
        h2, c2 = lstm_cell(gates2, c2)

        acc = acc + h2                                   # running time-sum

    # ---- Linear 2 + time-mean (W_l2 is pre-scaled by 1/T in the wrapper) ----
    out_ref[...] = (jnp.dot(acc.astype(MXU_DTYPE), w_l2_ref[...],
                            preferred_element_type=jnp.float32)
                    + b_l2_ref[...]).astype(out_ref.dtype)


def gru_block_forward(x, fused):
    """x: (B, C, T, H, W); fused: output of prepare_fused_params."""
    B, C, T, H, W = x.shape
    nh = fused["w_hh1"].shape[0]
    out_channel = fused["w_l2"].shape[-1]
    x4 = x.reshape(B, C, T, H * W)                       # free view, no HBM relayout

    kernel = functools.partial(_gru_block_kernel, B=B, C=C, T=T, nh=nh)
    return pl.pallas_call(
        kernel,
        out_shape=jax.ShapeDtypeStruct((B, out_channel), x.dtype),
        # No grid: the whole problem fits comfortably in VMEM on v5e/v6e/v7x.
    )(x4, fused["w_ih1"], fused["b1"], fused["w_hh1"],
      fused["w2"], fused["b2"], fused["w_l2"], fused["b_l2"])


# ---------------------------------------------------------------------------
# One-time weight preprocessing (outside the hot path).
# ---------------------------------------------------------------------------
def prepare_fused_params(params, T):
    """Fold Linear-1 into LSTM-2's input projection (in f32), stack
    [W_eff ; W_hh2] for a single per-step gate matmul, pre-scale W_l2 by 1/T."""
    f32 = lambda a: a.astype(jnp.float32)
    w_eff = f32(params["w_l1"]) @ f32(params["w_ih2"])            # (nh, 4nh)
    w2 = jnp.concatenate([w_eff, f32(params["w_hh2"])], axis=0)   # (2nh, 4nh)
    b2 = f32(params["b_l1"]) @ f32(params["w_ih2"]) + params["b2"]
    w_l2 = f32(params["w_l2"]) * (1.0 / T)
    return {
        "w_ih1": params["w_ih1"].astype(MXU_DTYPE),
        "b1":    params["b1"].astype(jnp.float32),
        "w_hh1": params["w_hh1"].astype(MXU_DTYPE),
        "w2":    w2.astype(MXU_DTYPE),
        "b2":    b2.astype(jnp.float32),
        "w_l2":  w_l2.astype(MXU_DTYPE),
        "b_l2":  params["b_l2"].astype(jnp.float32),
    }


# ---------------------------------------------------------------------------
# Parameter initialization (deterministic, PyTorch-style uniform).
# Gate weights packed along the last axis in (i, f, o, g) order -> 4*nh.
# ---------------------------------------------------------------------------
def init_params(key, in_channel, out_channel, nh):
    def u(k, shape, bound):
        return jax.random.uniform(k, shape, jnp.float32, -bound, bound)

    keys = jax.random.split(key, 12)
    kb = 1.0 / float(nh) ** 0.5
    w = lambda a: a.astype(MXU_DTYPE)
    return {
        # Block #1: LSTM(in_channel -> nh) + Linear(nh -> nh)
        "w_ih1": w(u(keys[0], (in_channel, 4 * nh), kb)),
        "w_hh1": w(u(keys[1], (nh, 4 * nh), kb)),
        "b1":    u(keys[2], (1, 4 * nh), kb) + u(keys[3], (1, 4 * nh), kb),
        "w_l1":  w(u(keys[4], (nh, nh), kb)),
        "b_l1":  u(keys[5], (1, nh), kb),
        # Block #2: LSTM(nh -> nh) + Linear(nh -> out_channel)
        "w_ih2": w(u(keys[6], (nh, 4 * nh), kb)),
        "w_hh2": w(u(keys[7], (nh, 4 * nh), kb)),
        "b2":    u(keys[8], (1, 4 * nh), kb) + u(keys[9], (1, 4 * nh), kb),
        "w_l2":  w(u(keys[10], (nh, out_channel), kb)),
        "b_l2":  u(keys[11], (1, out_channel), kb),
    }


# ---------------------------------------------------------------------------
# Pure-JAX f32 reference (unfused weights, scan-based LSTM).
# ---------------------------------------------------------------------------
def reference_forward(x, params):
    B, C, T, H, W = x.shape
    f32 = lambda a: a.astype(jnp.float32)
    pooled = jnp.max(x.reshape(B, C, T, H * W), axis=-1)          # (B, C, T)
    seq = jnp.transpose(pooled, (2, 0, 1))                        # (T, B, C)

    def lstm_ref(x_seq, w_ih, w_hh, b):
        nH = w_hh.shape[0]
        Bn = x_seq.shape[1]

        def step(carry, x_t):
            h, c = carry
            gates = x_t @ w_ih + h @ w_hh + b                     # i|f|o|g
            i = jax.nn.sigmoid(gates[:, :nH])
            f = jax.nn.sigmoid(gates[:, nH:2 * nH])
            o = jax.nn.sigmoid(gates[:, 2 * nH:3 * nH])
            g = jnp.tanh(gates[:, 3 * nH:])
            c = f * c + i * g
            h = o * jnp.tanh(c)
            return (h, c), h

        init = (jnp.zeros((Bn, nH), jnp.float32),
                jnp.zeros((Bn, nH), jnp.float32))
        _, hs = jax.lax.scan(step, init, x_seq)
        return hs

    h1 = lstm_ref(seq, f32(params["w_ih1"]), f32(params["w_hh1"]), params["b1"])
    h1 = h1 @ f32(params["w_l1"]) + params["b_l1"]
    h2 = lstm_ref(h1, f32(params["w_ih2"]), f32(params["w_hh2"]), params["b2"])
    h2 = h2 @ f32(params["w_l2"]) + params["b_l2"]
    return jnp.mean(h2, axis=0)                                   # (B, out)


if __name__ == "__main__":
    # Small shapes consistent with GRUBlock: x is (b, c, t, h, w).
    B, C, T, H, W = 2, 4, 8, 16, 16
    nh, out_channel = 32, 8

    key = jax.random.PRNGKey(0)
    kx, kp = jax.random.split(key)
    x = jax.random.normal(kx, (B, C, T, H, W), jnp.float32)
    params = init_params(kp, C, out_channel, nh)
    fused = prepare_fused_params(params, T)      # one-time weight preprocessing

    fwd = jax.jit(gru_block_forward)
    out = jax.block_until_ready(fwd(x, fused))
    ref = jax.block_until_ready(reference_forward(x, params))

    assert out.shape == (B, out_channel), out.shape
    # Pallas uses bf16 MXU operands with f32 accumulation; reference is pure f32.
    if not jnp.allclose(out, ref, atol=3e-2, rtol=3e-2):
        raise AssertionError("Pallas output mismatch vs pure-JAX reference")

    print("KERNEL_OK")
</pallas_src>

<mosaic_0001>
module attributes {stable_mosaic.version = 11 : i64} {
  func.func @_gru_block_kernel(%arg0: memref<2x4x8x256xf32, #tpu.memory_space<vmem>>, %arg1: memref<4x128xbf16, #tpu.memory_space<vmem>>, %arg2: memref<1x128xf32, #tpu.memory_space<vmem>>, %arg3: memref<32x128xbf16, #tpu.memory_space<vmem>>, %arg4: memref<64x128xbf16, #tpu.memory_space<vmem>>, %arg5: memref<1x128xf32, #tpu.memory_space<vmem>>, %arg6: memref<32x8xbf16, #tpu.memory_space<vmem>>, %arg7: memref<1x8xf32, #tpu.memory_space<vmem>>, %arg8: memref<2x8xf32, #tpu.memory_space<vmem>>) attributes {dimension_semantics = [], scalar_prefetch = 0 : i64, scratch_operands = 0 : i64, tpu.core_type = #tpu.core_type<tc>} {
    %c0 = arith.constant 0 : index
    %c0_0 = arith.constant 0 : index
    %0 = vector.load %arg1[%c0, %c0_0] : memref<4x128xbf16, #tpu.memory_space<vmem>>, vector<4x128xbf16>
    %c0_1 = arith.constant 0 : index
    %c0_2 = arith.constant 0 : index
    %1 = vector.load %arg2[%c0_1, %c0_2] : memref<1x128xf32, #tpu.memory_space<vmem>>, vector<1x128xf32>
    %c0_3 = arith.constant 0 : index
    %c0_4 = arith.constant 0 : index
    %c0_5 = arith.constant 0 : index
    %c0_6 = arith.constant 0 : index
    %2 = vector.load %arg0[%c0_3, %c0_4, %c0_5, %c0_6] : memref<2x4x8x256xf32, #tpu.memory_space<vmem>>, vector<2x4x1x256xf32>
    %3 = vector.shape_cast %2 : vector<2x4x1x256xf32> to vector<2x4x256xf32>
    %cst = arith.constant dense<0xFF800000> : vector<2x4xf32>
    %4 = vector.multi_reduction <maximumf>, %3, %cst [2] : vector<2x4x256xf32> to vector<2x4xf32>
    %5 = arith.truncf %4 : vector<2x4xf32> to vector<2x4xbf16>
    %cst_7 = arith.constant dense<0.000000e+00> : vector<2x128xf32>
    %6 = tpu.matmul %5, %0, %cst_7 {dimension_numbers = #tpu.dot_dimension_numbers<[1], [0], [0], [1], [0, 0, 1, 1], [], []>} : vector<2x4xbf16>, vector<4x128xbf16>, vector<2x128xf32> -> vector<2x128xf32>
    %7 = vector.broadcast %1 : vector<1x128xf32> to vector<2x128xf32>
    %8 = arith.addf %6, %7 : vector<2x128xf32>
    %c0_8 = arith.constant 0 : index
    %c0_9 = arith.constant 0 : index
    %c1 = arith.constant 1 : index
    %c0_10 = arith.constant 0 : index
    %9 = vector.load %arg0[%c0_8, %c0_9, %c1, %c0_10] : memref<2x4x8x256xf32, #tpu.memory_space<vmem>>, vector<2x4x1x256xf32>
    %10 = vector.shape_cast %9 : vector<2x4x1x256xf32> to vector<2x4x256xf32>
    %cst_11 = arith.constant dense<0xFF800000> : vector<2x4xf32>
    %11 = vector.multi_reduction <maximumf>, %10, %cst_11 [2] : vector<2x4x256xf32> to vector<2x4xf32>
    %12 = arith.truncf %11 : vector<2x4xf32> to vector<2x4xbf16>
    %cst_12 = arith.constant dense<0.000000e+00> : vector<2x128xf32>
    %13 = tpu.matmul %12, %0, %cst_12 {dimension_numbers = #tpu.dot_dimension_numbers<[1], [0], [0], [1], [0, 0, 1, 1], [], []>} : vector<2x4xbf16>, vector<4x128xbf16>, vector<2x128xf32> -> vector<2x128xf32>
    %14 = vector.broadcast %1 : vector<1x128xf32> to vector<2x128xf32>
    %15 = arith.addf %13, %14 : vector<2x128xf32>
    %c0_13 = arith.constant 0 : index
    %c0_14 = arith.constant 0 : index
    %c2 = arith.constant 2 : index
    %c0_15 = arith.constant 0 : index
    %16 = vector.load %arg0[%c0_13, %c0_14, %c2, %c0_15] : memref<2x4x8x256xf32, #tpu.memory_space<vmem>>, vector<2x4x1x256xf32>
    %17 = vector.shape_cast %16 : vector<2x4x1x256xf32> to vector<2x4x256xf32>
    %cst_16 = arith.constant dense<0xFF800000> : vector<2x4xf32>
    %18 = vector.multi_reduction <maximumf>, %17, %cst_16 [2] : vector<2x4x256xf32> to vector<2x4xf32>
    %19 = arith.truncf %18 : vector<2x4xf32> to vector<2x4xbf16>
    %cst_17 = arith.constant dense<0.000000e+00> : vector<2x128xf32>
    %20 = tpu.matmul %19, %0, %cst_17 {dimension_numbers = #tpu.dot_dimension_numbers<[1], [0], [0], [1], [0, 0, 1, 1], [], []>} : vector<2x4xbf16>, vector<4x128xbf16>, vector<2x128xf32> -> vector<2x128xf32>
    %21 = vector.broadcast %1 : vector<1x128xf32> to vector<2x128xf32>
    %22 = arith.addf %20, %21 : vector<2x128xf32>
    %c0_18 = arith.constant 0 : index
    %c0_19 = arith.constant 0 : index
    %c3 = arith.constant 3 : index
    %c0_20 = arith.constant 0 : index
    %23 = vector.load %arg0[%c0_18, %c0_19, %c3, %c0_20] : memref<2x4x8x256xf32, #tpu.memory_space<vmem>>, vector<2x4x1x256xf32>
    %24 = vector.shape_cast %23 : vector<2x4x1x256xf32> to vector<2x4x256xf32>
    %cst_21 = arith.constant dense<0xFF800000> : vector<2x4xf32>
    %25 = vector.multi_reduction <maximumf>, %24, %cst_21 [2] : vector<2x4x256xf32> to vector<2x4xf32>
    %26 = arith.truncf %25 : vector<2x4xf32> to vector<2x4xbf16>
    %cst_22 = arith.constant dense<0.000000e+00> : vector<2x128xf32>
    %27 = tpu.matmul %26, %0, %cst_22 {dimension_numbers = #tpu.dot_dimension_numbers<[1], [0], [0], [1], [0, 0, 1, 1], [], []>} : vector<2x4xbf16>, vector<4x128xbf16>, vector<2x128xf32> -> vector<2x128xf32>
    %28 = vector.broadcast %1 : vector<1x128xf32> to vector<2x128xf32>
    %29 = arith.addf %27, %28 : vector<2x128xf32>
    %c0_23 = arith.constant 0 : index
    %c0_24 = arith.constant 0 : index
    %c4 = arith.constant 4 : index
    %c0_25 = arith.constant 0 : index
    %30 = vector.load %arg0[%c0_23, %c0_24, %c4, %c0_25] : memref<2x4x8x256xf32, #tpu.memory_space<vmem>>, vector<2x4x1x256xf32>
    %31 = vector.shape_cast %30 : vector<2x4x1x256xf32> to vector<2x4x256xf32>
    %cst_26 = arith.constant dense<0xFF800000> : vector<2x4xf32>
    %32 = vector.multi_reduction <maximumf>, %31, %cst_26 [2] : vector<2x4x256xf32> to vector<2x4xf32>
    %33 = arith.truncf %32 : vector<2x4xf32> to vector<2x4xbf16>
    %cst_27 = arith.constant dense<0.000000e+00> : vector<2x128xf32>
    %34 = tpu.matmul %33, %0, %cst_27 {dimension_numbers = #tpu.dot_dimension_numbers<[1], [0], [0], [1], [0, 0, 1, 1], [], []>} : vector<2x4xbf16>, vector<4x128xbf16>, vector<2x128xf32> -> vector<2x128xf32>
    %35 = vector.broadcast %1 : vector<1x128xf32> to vector<2x128xf32>
    %36 = arith.addf %34, %35 : vector<2x128xf32>
    %c0_28 = arith.constant 0 : index
    %c0_29 = arith.constant 0 : index
    %c5 = arith.constant 5 : index
    %c0_30 = arith.constant 0 : index
    %37 = vector.load %arg0[%c0_28, %c0_29, %c5, %c0_30] : memref<2x4x8x256xf32, #tpu.memory_space<vmem>>, vector<2x4x1x256xf32>
    %38 = vector.shape_cast %37 : vector<2x4x1x256xf32> to vector<2x4x256xf32>
    %cst_31 = arith.constant dense<0xFF800000> : vector<2x4xf32>
    %39 = vector.multi_reduction <maximumf>, %38, %cst_31 [2] : vector<2x4x256xf32> to vector<2x4xf32>
    %40 = arith.truncf %39 : vector<2x4xf32> to vector<2x4xbf16>
    %cst_32 = arith.constant dense<0.000000e+00> : vector<2x128xf32>
    %41 = tpu.matmul %40, %0, %cst_32 {dimension_numbers = #tpu.dot_dimension_numbers<[1], [0], [0], [1], [0, 0, 1, 1], [], []>} : vector<2x4xbf16>, vector<4x128xbf16>, vector<2x128xf32> -> vector<2x128xf32>
    %42 = vector.broadcast %1 : vector<1x128xf32> to vector<2x128xf32>
    %43 = arith.addf %41, %42 : vector<2x128xf32>
    %c0_33 = arith.constant 0 : index
    %c0_34 = arith.constant 0 : index
    %c6 = arith.constant 6 : index
    %c0_35 = arith.constant 0 : index
    %44 = vector.load %arg0[%c0_33, %c0_34, %c6, %c0_35] : memref<2x4x8x256xf32, #tpu.memory_space<vmem>>, vector<2x4x1x256xf32>
    %45 = vector.shape_cast %44 : vector<2x4x1x256xf32> to vector<2x4x256xf32>
    %cst_36 = arith.constant dense<0xFF800000> : vector<2x4xf32>
    %46 = vector.multi_reduction <maximumf>, %45, %cst_36 [2] : vector<2x4x256xf32> to vector<2x4xf32>
    %47 = arith.truncf %46 : vector<2x4xf32> to vector<2x4xbf16>
    %cst_37 = arith.constant dense<0.000000e+00> : vector<2x128xf32>
    %48 = tpu.matmul %47, %0, %cst_37 {dimension_numbers = #tpu.dot_dimension_numbers<[1], [0], [0], [1], [0, 0, 1, 1], [], []>} : vector<2x4xbf16>, vector<4x128xbf16>, vector<2x128xf32> -> vector<2x128xf32>
    %49 = vector.broadcast %1 : vector<1x128xf32> to vector<2x128xf32>
    %50 = arith.addf %48, %49 : vector<2x128xf32>
    %c0_38 = arith.constant 0 : index
    %c0_39 = arith.constant 0 : index
    %c7 = arith.constant 7 : index
    %c0_40 = arith.constant 0 : index
    %51 = vector.load %arg0[%c0_38, %c0_39, %c7, %c0_40] : memref<2x4x8x256xf32, #tpu.memory_space<vmem>>, vector<2x4x1x256xf32>
    %52 = vector.shape_cast %51 : vector<2x4x1x256xf32> to vector<2x4x256xf32>
    %cst_41 = arith.constant dense<0xFF800000> : vector<2x4xf32>
    %53 = vector.multi_reduction <maximumf>, %52, %cst_41 [2] : vector<2x4x256xf32> to vector<2x4xf32>
    %54 = arith.truncf %53 : vector<2x4xf32> to vector<2x4xbf16>
    %cst_42 = arith.constant dense<0.000000e+00> : vector<2x128xf32>
    %55 = tpu.matmul %54, %0, %cst_42 {dimension_numbers = #tpu.dot_dimension_numbers<[1], [0], [0], [1], [0, 0, 1, 1], [], []>} : vector<2x4xbf16>, vector<4x128xbf16>, vector<2x128xf32> -> vector<2x128xf32>
    %56 = vector.broadcast %1 : vector<1x128xf32> to vector<2x128xf32>
    %57 = arith.addf %55, %56 : vector<2x128xf32>
    %c0_43 = arith.constant 0 : index
    %c0_44 = arith.constant 0 : index
    %58 = vector.load %arg3[%c0_43, %c0_44] : memref<32x128xbf16, #tpu.memory_space<vmem>>, vector<32x128xbf16>
    %c0_45 = arith.constant 0 : index
    %c0_46 = arith.constant 0 : index
    %59 = vector.load %arg4[%c0_45, %c0_46] : memref<64x128xbf16, #tpu.memory_space<vmem>>, vector<64x128xbf16>
    %c0_47 = arith.constant 0 : index
    %c0_48 = arith.constant 0 : index
    %60 = vector.load %arg5[%c0_47, %c0_48] : memref<1x128xf32, #tpu.memory_space<vmem>>, vector<1x128xf32>
    %cst_49 = arith.constant 0.000000e+00 : f32
    %61 = vector.broadcast %cst_49 : f32 to vector<2x32xf32>
    %62 = arith.truncf %61 : vector<2x32xf32> to vector<2x32xbf16>
    %cst_50 = arith.constant dense<0.000000e+00> : vector<2x128xf32>
    %63 = tpu.matmul %62, %58, %cst_50 {dimension_numbers = #tpu.dot_dimension_numbers<[1], [0], [0], [1], [0, 0, 1, 1], [], []>} : vector<2x32xbf16>, vector<32x128xbf16>, vector<2x128xf32> -> vector<2x128xf32>
    %64 = arith.addf %8, %63 : vector<2x128xf32>
    %65 = vector.extract_strided_slice %64 {offsets = [0, 0], sizes = [2, 96], strides = [1, 1]} : vector<2x128xf32> to vector<2x96xf32>
    %66 = arith.negf %65 : vector<2x96xf32>
    %67 = math.exp %66 : vector<2x96xf32>
    %cst_51 = arith.constant 1.000000e+00 : f32
    %68 = vector.broadcast %cst_51 : f32 to vector<2x96xf32>
    %69 = arith.addf %68, %67 : vector<2x96xf32>
    %70 = arith.divf %68, %69 : vector<2x96xf32>
    %71 = vector.extract_strided_slice %64 {offsets = [0, 96], sizes = [2, 32], strides = [1, 1]} : vector<2x128xf32> to vector<2x32xf32>
    %72 = math.tanh %71 : vector<2x32xf32>
    %73 = vector.extract_strided_slice %70 {offsets = [0, 0], sizes = [2, 32], strides = [1, 1]} : vector<2x96xf32> to vector<2x32xf32>
    %74 = vector.extract_strided_slice %70 {offsets = [0, 32], sizes = [2, 32], strides = [1, 1]} : vector<2x96xf32> to vector<2x32xf32>
    %75 = vector.extract_strided_slice %70 {offsets = [0, 64], sizes = [2, 32], strides = [1, 1]} : vector<2x96xf32> to vector<2x32xf32>
    %76 = arith.mulf %74, %61 : vector<2x32xf32>
    %77 = arith.mulf %73, %72 : vector<2x32xf32>
    %78 = arith.addf %76, %77 : vector<2x32xf32>
    %79 = math.tanh %78 : vector<2x32xf32>
    %80 = arith.mulf %75, %79 : vector<2x32xf32>
    %81 = tpu.concatenate %80, %61 in 1 : vector<2x32xf32>, vector<2x32xf32> -> vector<2x64xf32>
    %82 = arith.truncf %81 : vector<2x64xf32> to vector<2x64xbf16>
    %cst_52 = arith.constant dense<0.000000e+00> : vector<2x128xf32>
    %83 = tpu.matmul %82, %59, %cst_52 {dimension_numbers = #tpu.dot_dimension_numbers<[1], [0], [0], [1], [0, 0, 1, 1], [], []>} : vector<2x64xbf16>, vector<64x128xbf16>, vector<2x128xf32> -> vector<2x128xf32>
    %84 = vector.broadcast %60 : vector<1x128xf32> to vector<2x128xf32>
    %85 = arith.addf %83, %84 : vector<2x128xf32>
    %86 = vector.extract_strided_slice %85 {offsets = [0, 0], sizes = [2, 96], strides = [1, 1]} : vector<2x128xf32> to vector<2x96xf32>
    %87 = arith.negf %86 : vector<2x96xf32>
    %88 = math.exp %87 : vector<2x96xf32>
    %cst_53 = arith.constant 1.000000e+00 : f32
    %89 = vector.broadcast %cst_53 : f32 to vector<2x96xf32>
    %90 = arith.addf %89, %88 : vector<2x96xf32>
    %91 = arith.divf %89, %90 : vector<2x96xf32>
    %92 = vector.extract_strided_slice %85 {offsets = [0, 96], sizes = [2, 32], strides = [1, 1]} : vector<2x128xf32> to vector<2x32xf32>
    %93 = math.tanh %92 : vector<2x32xf32>
    %94 = vector.extract_strided_slice %91 {offsets = [0, 0], sizes = [2, 32], strides = [1, 1]} : vector<2x96xf32> to vector<2x32xf32>
    %95 = vector.extract_strided_slice %91 {offsets = [0, 32], sizes = [2, 32], strides = [1, 1]} : vector<2x96xf32> to vector<2x32xf32>
    %96 = vector.extract_strided_slice %91 {offsets = [0, 64], sizes = [2, 32], strides = [1, 1]} : vector<2x96xf32> to vector<2x32xf32>
    %97 = arith.mulf %95, %61 : vector<2x32xf32>
    %98 = arith.mulf %94, %93 : vector<2x32xf32>
    %99 = arith.addf %97, %98 : vector<2x32xf32>
    %100 = math.tanh %99 : vector<2x32xf32>
    %101 = arith.mulf %96, %100 : vector<2x32xf32>
    %102 = arith.addf %61, %101 : vector<2x32xf32>
    %103 = arith.truncf %80 : vector<2x32xf32> to vector<2x32xbf16>
    %cst_54 = arith.constant dense<0.000000e+00> : vector<2x128xf32>
    %104 = tpu.matmul %103, %58, %cst_54 {dimension_numbers = #tpu.dot_dimension_numbers<[1], [0], [0], [1], [0, 0, 1, 1], [], []>} : vector<2x32xbf16>, vector<32x128xbf16>, vector<2x128xf32> -> vector<2x128xf32>
    %105 = arith.addf %15, %104 : vector<2x128xf32>
    %106 = vector.extract_strided_slice %105 {offsets = [0, 0], sizes = [2, 96], strides = [1, 1]} : vector<2x128xf32> to vector<2x96xf32>
    %107 = arith.negf %106 : vector<2x96xf32>
    %108 = math.exp %107 : vector<2x96xf32>
    %cst_55 = arith.constant 1.000000e+00 : f32
    %109 = vector.broadcast %cst_55 : f32 to vector<2x96xf32>
    %110 = arith.addf %109, %108 : vector<2x96xf32>
    %111 = arith.divf %109, %110 : vector<2x96xf32>
    %112 = vector.extract_strided_slice %105 {offsets = [0, 96], sizes = [2, 32], strides = [1, 1]} : vector<2x128xf32> to vector<2x32xf32>
    %113 = math.tanh %112 : vector<2x32xf32>
    %114 = vector.extract_strided_slice %111 {offsets = [0, 0], sizes = [2, 32], strides = [1, 1]} : vector<2x96xf32> to vector<2x32xf32>
    %115 = vector.extract_strided_slice %111 {offsets = [0, 32], sizes = [2, 32], strides = [1, 1]} : vector<2x96xf32> to vector<2x32xf32>
    %116 = vector.extract_strided_slice %111 {offsets = [0, 64], sizes = [2, 32], strides = [1, 1]} : vector<2x96xf32> to vector<2x32xf32>
    %117 = arith.mulf %115, %78 : vector<2x32xf32>
    %118 = arith.mulf %114, %113 : vector<2x32xf32>
    %119 = arith.addf %117, %118 : vector<2x32xf32>
    %120 = math.tanh %119 : vector<2x32xf32>
    %121 = arith.mulf %116, %120 : vector<2x32xf32>
    %122 = tpu.concatenate %121, %101 in 1 : vector<2x32xf32>, vector<2x32xf32> -> vector<2x64xf32>
    %123 = arith.truncf %122 : vector<2x64xf32> to vector<2x64xbf16>
    %cst_56 = arith.constant dense<0.000000e+00> : vector<2x128xf32>
    %124 = tpu.matmul %123, %59, %cst_56 {dimension_numbers = #tpu.dot_dimension_numbers<[1], [0], [0], [1], [0, 0, 1, 1], [], []>} : vector<2x64xbf16>, vector<64x128xbf16>, vector<2x128xf32> -> vector<2x128xf32>
    %125 = vector.broadcast %60 : vector<1x128xf32> to vector<2x128xf32>
    %126 = arith.addf %124, %125 : vector<2x128xf32>
    %127 = vector.extract_strided_slice %126 {offsets = [0, 0], sizes = [2, 96], strides = [1, 1]} : vector<2x128xf32> to vector<2x96xf32>
    %128 = arith.negf %127 : vector<2x96xf32>
    %129 = math.exp %128 : vector<2x96xf32>
    %cst_57 = arith.constant 1.000000e+00 : f32
    %130 = vector.broadcast %cst_57 : f32 to vector<2x96xf32>
    %131 = arith.addf %130, %129 : vector<2x96xf32>
    %132 = arith.divf %130, %131 : vector<2x96xf32>
    %133 = vector.extract_strided_slice %126 {offsets = [0, 96], sizes = [2, 32], strides = [1, 1]} : vector<2x128xf32> to vector<2x32xf32>
    %134 = math.tanh %133 : vector<2x32xf32>
    %135 = vector.extract_strided_slice %132 {offsets = [0, 0], sizes = [2, 32], strides = [1, 1]} : vector<2x96xf32> to vector<2x32xf32>
    %136 = vector.extract_strided_slice %132 {offsets = [0, 32], sizes = [2, 32], strides = [1, 1]} : vector<2x96xf32> to vector<2x32xf32>
    %137 = vector.extract_strided_slice %132 {offsets = [0, 64], sizes = [2, 32], strides = [1, 1]} : vector<2x96xf32> to vector<2x32xf32>
    %138 = arith.mulf %136, %99 : vector<2x32xf32>
    %139 = arith.mulf %135, %134 : vector<2x32xf32>
    %140 = arith.addf %138, %139 : vector<2x32xf32>
    %141 = math.tanh %140 : vector<2x32xf32>
    %142 = arith.mulf %137, %141 : vector<2x32xf32>
    %143 = arith.addf %102, %142 : vector<2x32xf32>
    %144 = arith.truncf %121 : vector<2x32xf32> to vector<2x32xbf16>
    %cst_58 = arith.constant dense<0.000000e+00> : vector<2x128xf32>
    %145 = tpu.matmul %144, %58, %cst_58 {dimension_numbers = #tpu.dot_dimension_numbers<[1], [0], [0], [1], [0, 0, 1, 1], [], []>} : vector<2x32xbf16>, vector<32x128xbf16>, vector<2x128xf32> -> vector<2x128xf32>
    %146 = arith.addf %22, %145 : vector<2x128xf32>
    %147 = vector.extract_strided_slice %146 {offsets = [0, 0], sizes = [2, 96], strides = [1, 1]} : vector<2x128xf32> to vector<2x96xf32>
    %148 = arith.negf %147 : vector<2x96xf32>
    %149 = math.exp %148 : vector<2x96xf32>
    %cst_59 = arith.constant 1.000000e+00 : f32
    %150 = vector.broadcast %cst_59 : f32 to vector<2x96xf32>
    %151 = arith.addf %150, %149 : vector<2x96xf32>
    %152 = arith.divf %150, %151 : vector<2x96xf32>
    %153 = vector.extract_strided_slice %146 {offsets = [0, 96], sizes = [2, 32], strides = [1, 1]} : vector<2x128xf32> to vector<2x32xf32>
    %154 = math.tanh %153 : vector<2x32xf32>
    %155 = vector.extract_strided_slice %152 {offsets = [0, 0], sizes = [2, 32], strides = [1, 1]} : vector<2x96xf32> to vector<2x32xf32>
    %156 = vector.extract_strided_slice %152 {offsets = [0, 32], sizes = [2, 32], strides = [1, 1]} : vector<2x96xf32> to vector<2x32xf32>
    %157 = vector.extract_strided_slice %152 {offsets = [0, 64], sizes = [2, 32], strides = [1, 1]} : vector<2x96xf32> to vector<2x32xf32>
    %158 = arith.mulf %156, %119 : vector<2x32xf32>
    %159 = arith.mulf %155, %154 : vector<2x32xf32>
    %160 = arith.addf %158, %159 : vector<2x32xf32>
    %161 = math.tanh %160 : vector<2x32xf32>
    %162 = arith.mulf %157, %161 : vector<2x32xf32>
    %163 = tpu.concatenate %162, %142 in 1 : vector<2x32xf32>, vector<2x32xf32> -> vector<2x64xf32>
    %164 = arith.truncf %163 : vector<2x64xf32> to vector<2x64xbf16>
    %cst_60 = arith.constant dense<0.000000e+00> : vector<2x128xf32>
    %165 = tpu.matmul %164, %59, %cst_60 {dimension_numbers = #tpu.dot_dimension_numbers<[1], [0], [0], [1], [0, 0, 1, 1], [], []>} : vector<2x64xbf16>, vector<64x128xbf16>, vector<2x128xf32> -> vector<2x128xf32>
    %166 = vector.broadcast %60 : vector<1x128xf32> to vector<2x128xf32>
    %167 = arith.addf %165, %166 : vector<2x128xf32>
    %168 = vector.extract_strided_slice %167 {offsets = [0, 0], sizes = [2, 96], strides = [1, 1]} : vector<2x128xf32> to vector<2x96xf32>
    %169 = arith.negf %168 : vector<2x96xf32>
    %170 = math.exp %169 : vector<2x96xf32>
    %cst_61 = arith.constant 1.000000e+00 : f32
    %171 = vector.broadcast %cst_61 : f32 to vector<2x96xf32>
    %172 = arith.addf %171, %170 : vector<2x96xf32>
    %173 = arith.divf %171, %172 : vector<2x96xf32>
    %174 = vector.extract_strided_slice %167 {offsets = [0, 96], sizes = [2, 32], strides = [1, 1]} : vector<2x128xf32> to vector<2x32xf32>
    %175 = math.tanh %174 : vector<2x32xf32>
    %176 = vector.extract_strided_slice %173 {offsets = [0, 0], sizes = [2, 32], strides = [1, 1]} : vector<2x96xf32> to vector<2x32xf32>
    %177 = vector.extract_strided_slice %173 {offsets = [0, 32], sizes = [2, 32], strides = [1, 1]} : vector<2x96xf32> to vector<2x32xf32>
    %178 = vector.extract_strided_slice %173 {offsets = [0, 64], sizes = [2, 32], strides = [1, 1]} : vector<2x96xf32> to vector<2x32xf32>
    %179 = arith.mulf %177, %140 : vector<2x32xf32>
    %180 = arith.mulf %176, %175 : vector<2x32xf32>
    %181 = arith.addf %179, %180 : vector<2x32xf32>
    %182 = math.tanh %181 : vector<2x32xf32>
    %183 = arith.mulf %178, %182 : vector<2x32xf32>
    %184 = arith.addf %143, %183 : vector<2x32xf32>
    %185 = arith.truncf %162 : vector<2x32xf32> to vector<2x32xbf16>
    %cst_62 = arith.constant dense<0.000000e+00> : vector<2x128xf32>
    %186 = tpu.matmul %185, %58, %cst_62 {dimension_numbers = #tpu.dot_dimension_numbers<[1], [0], [0], [1], [0, 0, 1, 1], [], []>} : vector<2x32xbf16>, vector<32x128xbf16>, vector<2x128xf32> -> vector<2x128xf32>
    %187 = arith.addf %29, %186 : vector<2x128xf32>
    %188 = vector.extract_strided_slice %187 {offsets = [0, 0], sizes = [2, 96], strides = [1, 1]} : vector<2x128xf32> to vector<2x96xf32>
    %189 = arith.negf %188 : vector<2x96xf32>
    %190 = math.exp %189 : vector<2x96xf32>
    %cst_63 = arith.constant 1.000000e+00 : f32
    %191 = vector.broadcast %cst_63 : f32 to vector<2x96xf32>
    %192 = arith.addf %191, %190 : vector<2x96xf32>
    %193 = arith.divf %191, %192 : vector<2x96xf32>
    %194 = vector.extract_strided_slice %187 {offsets = [0, 96], sizes = [2, 32], strides = [1, 1]} : vector<2x128xf32> to vector<2x32xf32>
    %195 = math.tanh %194 : vector<2x32xf32>
    %196 = vector.extract_strided_slice %193 {offsets = [0, 0], sizes = [2, 32], strides = [1, 1]} : vector<2x96xf32> to vector<2x32xf32>
    %197 = vector.extract_strided_slice %193 {offsets = [0, 32], sizes = [2, 32], strides = [1, 1]} : vector<2x96xf32> to vector<2x32xf32>
    %198 = vector.extract_strided_slice %193 {offsets = [0, 64], sizes = [2, 32], strides = [1, 1]} : vector<2x96xf32> to vector<2x32xf32>
    %199 = arith.mulf %197, %160 : vector<2x32xf32>
    %200 = arith.mulf %196, %195 : vector<2x32xf32>
    %201 = arith.addf %199, %200 : vector<2x32xf32>
    %202 = math.tanh %201 : vector<2x32xf32>
    %203 = arith.mulf %198, %202 : vector<2x32xf32>
    %204 = tpu.concatenate %203, %183 in 1 : vector<2x32xf32>, vector<2x32xf32> -> vector<2x64xf32>
    %205 = arith.truncf %204 : vector<2x64xf32> to vector<2x64xbf16>
    %cst_64 = arith.constant dense<0.000000e+00> : vector<2x128xf32>
    %206 = tpu.matmul %205, %59, %cst_64 {dimension_numbers = #tpu.dot_dimension_numbers<[1], [0], [0], [1], [0, 0, 1, 1], [], []>} : vector<2x64xbf16>, vector<64x128xbf16>, vector<2x128xf32> -> vector<2x128xf32>
    %207 = vector.broadcast %60 : vector<1x128xf32> to vector<2x128xf32>
    %208 = arith.addf %206, %207 : vector<2x128xf32>
    %209 = vector.extract_strided_slice %208 {offsets = [0, 0], sizes = [2, 96], strides = [1, 1]} : vector<2x128xf32> to vector<2x96xf32>
    %210 = arith.negf %209 : vector<2x96xf32>
    %211 = math.exp %210 : vector<2x96xf32>
    %cst_65 = arith.constant 1.000000e+00 : f32
    %212 = vector.broadcast %cst_65 : f32 to vector<2x96xf32>
    %213 = arith.addf %212, %211 : vector<2x96xf32>
    %214 = arith.divf %212, %213 : vector<2x96xf32>
    %215 = vector.extract_strided_slice %208 {offsets = [0, 96], sizes = [2, 32], strides = [1, 1]} : vector<2x128xf32> to vector<2x32xf32>
    %216 = math.tanh %215 : vector<2x32xf32>
    %217 = vector.extract_strided_slice %214 {offsets = [0, 0], sizes = [2, 32], strides = [1, 1]} : vector<2x96xf32> to vector<2x32xf32>
    %218 = vector.extract_strided_slice %214 {offsets = [0, 32], sizes = [2, 32], strides = [1, 1]} : vector<2x96xf32> to vector<2x32xf32>
    %219 = vector.extract_strided_slice %214 {offsets = [0, 64], sizes = [2, 32], strides = [1, 1]} : vector<2x96xf32> to vector<2x32xf32>
    %220 = arith.mulf %218, %181 : vector<2x32xf32>
    %221 = arith.mulf %217, %216 : vector<2x32xf32>
    %222 = arith.addf %220, %221 : vector<2x32xf32>
    %223 = math.tanh %222 : vector<2x32xf32>
    %224 = arith.mulf %219, %223 : vector<2x32xf32>
    %225 = arith.addf %184, %224 : vector<2x32xf32>
    %226 = arith.truncf %203 : vector<2x32xf32> to vector<2x32xbf16>
    %cst_66 = arith.constant dense<0.000000e+00> : vector<2x128xf32>
    %227 = tpu.matmul %226, %58, %cst_66 {dimension_numbers = #tpu.dot_dimension_numbers<[1], [0], [0], [1], [0, 0, 1, 1], [], []>} : vector<2x32xbf16>, vector<32x128xbf16>, vector<2x128xf32> -> vector<2x128xf32>
    %228 = arith.addf %36, %227 : vector<2x128xf32>
    %229 = vector.extract_strided_slice %228 {offsets = [0, 0], sizes = [2, 96], strides = [1, 1]} : vector<2x128xf32> to vector<2x96xf32>
    %230 = arith.negf %229 : vector<2x96xf32>
    %231 = math.exp %230 : vector<2x96xf32>
    %cst_67 = arith.constant 1.000000e+00 : f32
    %232 = vector.broadcast %cst_67 : f32 to vector<2x96xf32>
    %233 = arith.addf %232, %231 : vector<2x96xf32>
    %234 = arith.divf %232, %233 : vector<2x96xf32>
    %235 = vector.extract_strided_slice %228 {offsets = [0, 96], sizes = [2, 32], strides = [1, 1]} : vector<2x128xf32> to vector<2x32xf32>
    %236 = math.tanh %235 : vector<2x32xf32>
    %237 = vector.extract_strided_slice %234 {offsets = [0, 0], sizes = [2, 32], strides = [1, 1]} : vector<2x96xf32> to vector<2x32xf32>
    %238 = vector.extract_strided_slice %234 {offsets = [0, 32], sizes = [2, 32], strides = [1, 1]} : vector<2x96xf32> to vector<2x32xf32>
    %239 = vector.extract_strided_slice %234 {offsets = [0, 64], sizes = [2, 32], strides = [1, 1]} : vector<2x96xf32> to vector<2x32xf32>
    %240 = arith.mulf %238, %201 : vector<2x32xf32>
    %241 = arith.mulf %237, %236 : vector<2x32xf32>
    %242 = arith.addf %240, %241 : vector<2x32xf32>
    %243 = math.tanh %242 : vector<2x32xf32>
    %244 = arith.mulf %239, %243 : vector<2x32xf32>
    %245 = tpu.concatenate %244, %224 in 1 : vector<2x32xf32>, vector<2x32xf32> -> vector<2x64xf32>
    %246 = arith.truncf %245 : vector<2x64xf32> to vector<2x64xbf16>
    %cst_68 = arith.constant dense<0.000000e+00> : vector<2x128xf32>
    %247 = tpu.matmul %246, %59, %cst_68 {dimension_numbers = #tpu.dot_dimension_numbers<[1], [0], [0], [1], [0, 0, 1, 1], [], []>} : vector<2x64xbf16>, vector<64x128xbf16>, vector<2x128xf32> -> vector<2x128xf32>
    %248 = vector.broadcast %60 : vector<1x128xf32> to vector<2x128xf32>
    %249 = arith.addf %247, %248 : vector<2x128xf32>
    %250 = vector.extract_strided_slice %249 {offsets = [0, 0], sizes = [2, 96], strides = [1, 1]} : vector<2x128xf32> to vector<2x96xf32>
    %251 = arith.negf %250 : vector<2x96xf32>
    %252 = math.exp %251 : vector<2x96xf32>
    %cst_69 = arith.constant 1.000000e+00 : f32
    %253 = vector.broadcast %cst_69 : f32 to vector<2x96xf32>
    %254 = arith.addf %253, %252 : vector<2x96xf32>
    %255 = arith.divf %253, %254 : vector<2x96xf32>
    %256 = vector.extract_strided_slice %249 {offsets = [0, 96], sizes = [2, 32], strides = [1, 1]} : vector<2x128xf32> to vector<2x32xf32>
    %257 = math.tanh %256 : vector<2x32xf32>
    %258 = vector.extract_strided_slice %255 {offsets = [0, 0], sizes = [2, 32], strides = [1, 1]} : vector<2x96xf32> to vector<2x32xf32>
    %259 = vector.extract_strided_slice %255 {offsets = [0, 32], sizes = [2, 32], strides = [1, 1]} : vector<2x96xf32> to vector<2x32xf32>
    %260 = vector.extract_strided_slice %255 {offsets = [0, 64], sizes = [2, 32], strides = [1, 1]} : vector<2x96xf32> to vector<2x32xf32>
    %261 = arith.mulf %259, %222 : vector<2x32xf32>
    %262 = arith.mulf %258, %257 : vector<2x32xf32>
    %263 = arith.addf %261, %262 : vector<2x32xf32>
    %264 = math.tanh %263 : vector<2x32xf32>
    %265 = arith.mulf %260, %264 : vector<2x32xf32>
    %266 = arith.addf %225, %265 : vector<2x32xf32>
    %267 = arith.truncf %244 : vector<2x32xf32> to vector<2x32xbf16>
    %cst_70 = arith.constant dense<0.000000e+00> : vector<2x128xf32>
    %268 = tpu.matmul %267, %58, %cst_70 {dimension_numbers = #tpu.dot_dimension_numbers<[1], [0], [0], [1], [0, 0, 1, 1], [], []>} : vector<2x32xbf16>, vector<32x128xbf16>, vector<2x128xf32> -> vector<2x128xf32>
    %269 = arith.addf %43, %268 : vector<2x128xf32>
    %270 = vector.extract_strided_slice %269 {offsets = [0, 0], sizes = [2, 96], strides = [1, 1]} : vector<2x128xf32> to vector<2x96xf32>
    %271 = arith.negf %270 : vector<2x96xf32>
    %272 = math.exp %271 : vector<2x96xf32>
    %cst_71 = arith.constant 1.000000e+00 : f32
    %273 = vector.broadcast %cst_71 : f32 to vector<2x96xf32>
    %274 = arith.addf %273, %272 : vector<2x96xf32>
    %275 = arith.divf %273, %274 : vector<2x96xf32>
    %276 = vector.extract_strided_slice %269 {offsets = [0, 96], sizes = [2, 32], strides = [1, 1]} : vector<2x128xf32> to vector<2x32xf32>
    %277 = math.tanh %276 : vector<2x32xf32>
    %278 = vector.extract_strided_slice %275 {offsets = [0, 0], sizes = [2, 32], strides = [1, 1]} : vector<2x96xf32> to vector<2x32xf32>
    %279 = vector.extract_strided_slice %275 {offsets = [0, 32], sizes = [2, 32], strides = [1, 1]} : vector<2x96xf32> to vector<2x32xf32>
    %280 = vector.extract_strided_slice %275 {offsets = [0, 64], sizes = [2, 32], strides = [1, 1]} : vector<2x96xf32> to vector<2x32xf32>
    %281 = arith.mulf %279, %242 : vector<2x32xf32>
    %282 = arith.mulf %278, %277 : vector<2x32xf32>
    %283 = arith.addf %281, %282 : vector<2x32xf32>
    %284 = math.tanh %283 : vector<2x32xf32>
    %285 = arith.mulf %280, %284 : vector<2x32xf32>
    %286 = tpu.concatenate %285, %265 in 1 : vector<2x32xf32>, vector<2x32xf32> -> vector<2x64xf32>
    %287 = arith.truncf %286 : vector<2x64xf32> to vector<2x64xbf16>
    %cst_72 = arith.constant dense<0.000000e+00> : vector<2x128xf32>
    %288 = tpu.matmul %287, %59, %cst_72 {dimension_numbers = #tpu.dot_dimension_numbers<[1], [0], [0], [1], [0, 0, 1, 1], [], []>} : vector<2x64xbf16>, vector<64x128xbf16>, vector<2x128xf32> -> vector<2x128xf32>
    %289 = vector.broadcast %60 : vector<1x128xf32> to vector<2x128xf32>
    %290 = arith.addf %288, %289 : vector<2x128xf32>
    %291 = vector.extract_strided_slice %290 {offsets = [0, 0], sizes = [2, 96], strides = [1, 1]} : vector<2x128xf32> to vector<2x96xf32>
    %292 = arith.negf %291 : vector<2x96xf32>
    %293 = math.exp %292 : vector<2x96xf32>
    %cst_73 = arith.constant 1.000000e+00 : f32
    %294 = vector.broadcast %cst_73 : f32 to vector<2x96xf32>
    %295 = arith.addf %294, %293 : vector<2x96xf32>
    %296 = arith.divf %294, %295 : vector<2x96xf32>
    %297 = vector.extract_strided_slice %290 {offsets = [0, 96], sizes = [2, 32], strides = [1, 1]} : vector<2x128xf32> to vector<2x32xf32>
    %298 = math.tanh %297 : vector<2x32xf32>
    %299 = vector.extract_strided_slice %296 {offsets = [0, 0], sizes = [2, 32], strides = [1, 1]} : vector<2x96xf32> to vector<2x32xf32>
    %300 = vector.extract_strided_slice %296 {offsets = [0, 32], sizes = [2, 32], strides = [1, 1]} : vector<2x96xf32> to vector<2x32xf32>
    %301 = vector.extract_strided_slice %296 {offsets = [0, 64], sizes = [2, 32], strides = [1, 1]} : vector<2x96xf32> to vector<2x32xf32>
    %302 = arith.mulf %300, %263 : vector<2x32xf32>
    %303 = arith.mulf %299, %298 : vector<2x32xf32>
    %304 = arith.addf %302, %303 : vector<2x32xf32>
    %305 = math.tanh %304 : vector<2x32xf32>
    %306 = arith.mulf %301, %305 : vector<2x32xf32>
    %307 = arith.addf %266, %306 : vector<2x32xf32>
    %308 = arith.truncf %285 : vector<2x32xf32> to vector<2x32xbf16>
    %cst_74 = arith.constant dense<0.000000e+00> : vector<2x128xf32>
    %309 = tpu.matmul %308, %58, %cst_74 {dimension_numbers = #tpu.dot_dimension_numbers<[1], [0], [0], [1], [0, 0, 1, 1], [], []>} : vector<2x32xbf16>, vector<32x128xbf16>, vector<2x128xf32> -> vector<2x128xf32>
    %310 = arith.addf %50, %309 : vector<2x128xf32>
    %311 = vector.extract_strided_slice %310 {offsets = [0, 0], sizes = [2, 96], strides = [1, 1]} : vector<2x128xf32> to vector<2x96xf32>
    %312 = arith.negf %311 : vector<2x96xf32>
    %313 = math.exp %312 : vector<2x96xf32>
    %cst_75 = arith.constant 1.000000e+00 : f32
    %314 = vector.broadcast %cst_75 : f32 to vector<2x96xf32>
    %315 = arith.addf %314, %313 : vector<2x96xf32>
    %316 = arith.divf %314, %315 : vector<2x96xf32>
    %317 = vector.extract_strided_slice %310 {offsets = [0, 96], sizes = [2, 32], strides = [1, 1]} : vector<2x128xf32> to vector<2x32xf32>
    %318 = math.tanh %317 : vector<2x32xf32>
    %319 = vector.extract_strided_slice %316 {offsets = [0, 0], sizes = [2, 32], strides = [1, 1]} : vector<2x96xf32> to vector<2x32xf32>
    %320 = vector.extract_strided_slice %316 {offsets = [0, 32], sizes = [2, 32], strides = [1, 1]} : vector<2x96xf32> to vector<2x32xf32>
    %321 = vector.extract_strided_slice %316 {offsets = [0, 64], sizes = [2, 32], strides = [1, 1]} : vector<2x96xf32> to vector<2x32xf32>
    %322 = arith.mulf %320, %283 : vector<2x32xf32>
    %323 = arith.mulf %319, %318 : vector<2x32xf32>
    %324 = arith.addf %322, %323 : vector<2x32xf32>
    %325 = math.tanh %324 : vector<2x32xf32>
    %326 = arith.mulf %321, %325 : vector<2x32xf32>
    %327 = tpu.concatenate %326, %306 in 1 : vector<2x32xf32>, vector<2x32xf32> -> vector<2x64xf32>
    %328 = arith.truncf %327 : vector<2x64xf32> to vector<2x64xbf16>
    %cst_76 = arith.constant dense<0.000000e+00> : vector<2x128xf32>
    %329 = tpu.matmul %328, %59, %cst_76 {dimension_numbers = #tpu.dot_dimension_numbers<[1], [0], [0], [1], [0, 0, 1, 1], [], []>} : vector<2x64xbf16>, vector<64x128xbf16>, vector<2x128xf32> -> vector<2x128xf32>
    %330 = vector.broadcast %60 : vector<1x128xf32> to vector<2x128xf32>
    %331 = arith.addf %329, %330 : vector<2x128xf32>
    %332 = vector.extract_strided_slice %331 {offsets = [0, 0], sizes = [2, 96], strides = [1, 1]} : vector<2x128xf32> to vector<2x96xf32>
    %333 = arith.negf %332 : vector<2x96xf32>
    %334 = math.exp %333 : vector<2x96xf32>
    %cst_77 = arith.constant 1.000000e+00 : f32
    %335 = vector.broadcast %cst_77 : f32 to vector<2x96xf32>
    %336 = arith.addf %335, %334 : vector<2x96xf32>
    %337 = arith.divf %335, %336 : vector<2x96xf32>
    %338 = vector.extract_strided_slice %331 {offsets = [0, 96], sizes = [2, 32], strides = [1, 1]} : vector<2x128xf32> to vector<2x32xf32>
    %339 = math.tanh %338 : vector<2x32xf32>
    %340 = vector.extract_strided_slice %337 {offsets = [0, 0], sizes = [2, 32], strides = [1, 1]} : vector<2x96xf32> to vector<2x32xf32>
    %341 = vector.extract_strided_slice %337 {offsets = [0, 32], sizes = [2, 32], strides = [1, 1]} : vector<2x96xf32> to vector<2x32xf32>
    %342 = vector.extract_strided_slice %337 {offsets = [0, 64], sizes = [2, 32], strides = [1, 1]} : vector<2x96xf32> to vector<2x32xf32>
    %343 = arith.mulf %341, %304 : vector<2x32xf32>
    %344 = arith.mulf %340, %339 : vector<2x32xf32>
    %345 = arith.addf %343, %344 : vector<2x32xf32>
    %346 = math.tanh %345 : vector<2x32xf32>
    %347 = arith.mulf %342, %346 : vector<2x32xf32>
    %348 = arith.addf %307, %347 : vector<2x32xf32>
    %349 = arith.truncf %326 : vector<2x32xf32> to vector<2x32xbf16>
    %cst_78 = arith.constant dense<0.000000e+00> : vector<2x128xf32>
    %350 = tpu.matmul %349, %58, %cst_78 {dimension_numbers = #tpu.dot_dimension_numbers<[1], [0], [0], [1], [0, 0, 1, 1], [], []>} : vector<2x32xbf16>, vector<32x128xbf16>, vector<2x128xf32> -> vector<2x128xf32>
    %351 = arith.addf %57, %350 : vector<2x128xf32>
    %352 = vector.extract_strided_slice %351 {offsets = [0, 0], sizes = [2, 96], strides = [1, 1]} : vector<2x128xf32> to vector<2x96xf32>
    %353 = arith.negf %352 : vector<2x96xf32>
    %354 = math.exp %353 : vector<2x96xf32>
    %cst_79 = arith.constant 1.000000e+00 : f32
    %355 = vector.broadcast %cst_79 : f32 to vector<2x96xf32>
    %356 = arith.addf %355, %354 : vector<2x96xf32>
    %357 = arith.divf %355, %356 : vector<2x96xf32>
    %358 = vector.extract_strided_slice %351 {offsets = [0, 96], sizes = [2, 32], strides = [1, 1]} : vector<2x128xf32> to vector<2x32xf32>
    %359 = math.tanh %358 : vector<2x32xf32>
    %360 = vector.extract_strided_slice %357 {offsets = [0, 0], sizes = [2, 32], strides = [1, 1]} : vector<2x96xf32> to vector<2x32xf32>
    %361 = vector.extract_strided_slice %357 {offsets = [0, 32], sizes = [2, 32], strides = [1, 1]} : vector<2x96xf32> to vector<2x32xf32>
    %362 = vector.extract_strided_slice %357 {offsets = [0, 64], sizes = [2, 32], strides = [1, 1]} : vector<2x96xf32> to vector<2x32xf32>
    %363 = arith.mulf %361, %324 : vector<2x32xf32>
    %364 = arith.mulf %360, %359 : vector<2x32xf32>
    %365 = arith.addf %363, %364 : vector<2x32xf32>
    %366 = math.tanh %365 : vector<2x32xf32>
    %367 = arith.mulf %362, %366 : vector<2x32xf32>
    %368 = tpu.concatenate %367, %347 in 1 : vector<2x32xf32>, vector<2x32xf32> -> vector<2x64xf32>
    %369 = arith.truncf %368 : vector<2x64xf32> to vector<2x64xbf16>
    %cst_80 = arith.constant dense<0.000000e+00> : vector<2x128xf32>
    %370 = tpu.matmul %369, %59, %cst_80 {dimension_numbers = #tpu.dot_dimension_numbers<[1], [0], [0], [1], [0, 0, 1, 1], [], []>} : vector<2x64xbf16>, vector<64x128xbf16>, vector<2x128xf32> -> vector<2x128xf32>
    %371 = vector.broadcast %60 : vector<1x128xf32> to vector<2x128xf32>
    %372 = arith.addf %370, %371 : vector<2x128xf32>
    %373 = vector.extract_strided_slice %372 {offsets = [0, 0], sizes = [2, 96], strides = [1, 1]} : vector<2x128xf32> to vector<2x96xf32>
    %374 = arith.negf %373 : vector<2x96xf32>
    %375 = math.exp %374 : vector<2x96xf32>
    %cst_81 = arith.constant 1.000000e+00 : f32
    %376 = vector.broadcast %cst_81 : f32 to vector<2x96xf32>
    %377 = arith.addf %376, %375 : vector<2x96xf32>
    %378 = arith.divf %376, %377 : vector<2x96xf32>
    %379 = vector.extract_strided_slice %372 {offsets = [0, 96], sizes = [2, 32], strides = [1, 1]} : vector<2x128xf32> to vector<2x32xf32>
    %380 = math.tanh %379 : vector<2x32xf32>
    %381 = vector.extract_strided_slice %378 {offsets = [0, 0], sizes = [2, 32], strides = [1, 1]} : vector<2x96xf32> to vector<2x32xf32>
    %382 = vector.extract_strided_slice %378 {offsets = [0, 32], sizes = [2, 32], strides = [1, 1]} : vector<2x96xf32> to vector<2x32xf32>
    %383 = vector.extract_strided_slice %378 {offsets = [0, 64], sizes = [2, 32], strides = [1, 1]} : vector<2x96xf32> to vector<2x32xf32>
    %384 = arith.mulf %382, %345 : vector<2x32xf32>
    %385 = arith.mulf %381, %380 : vector<2x32xf32>
    %386 = arith.addf %384, %385 : vector<2x32xf32>
    %387 = math.tanh %386 : vector<2x32xf32>
    %388 = arith.mulf %383, %387 : vector<2x32xf32>
    %389 = arith.addf %348, %388 : vector<2x32xf32>
    %390 = arith.truncf %389 : vector<2x32xf32> to vector<2x32xbf16>
    %c0_82 = arith.constant 0 : index
    %c0_83 = arith.constant 0 : index
    %391 = vector.load %arg6[%c0_82, %c0_83] : memref<32x8xbf16, #tpu.memory_space<vmem>>, vector<32x8xbf16>
    %cst_84 = arith.constant dense<0.000000e+00> : vector<2x8xf32>
    %392 = tpu.matmul %390, %391, %cst_84 {dimension_numbers = #tpu.dot_dimension_numbers<[1], [0], [0], [1], [0, 0, 1, 1], [], []>} : vector<2x32xbf16>, vector<32x8xbf16>, vector<2x8xf32> -> vector<2x8xf32>
    %c0_85 = arith.constant 0 : index
    %c0_86 = arith.constant 0 : index
    %393 = vector.load %arg7[%c0_85, %c0_86] : memref<1x8xf32, #tpu.memory_space<vmem>>, vector<1x8xf32>
    %394 = vector.broadcast %393 : vector<1x8xf32> to vector<2x8xf32>
    %395 = arith.addf %392, %394 : vector<2x8xf32>
    %c0_87 = arith.constant 0 : index
    %c0_88 = arith.constant 0 : index
    %396 = vector.load %arg8[%c0_87, %c0_88] : memref<2x8xf32, #tpu.memory_space<vmem>>, vector<2x8xf32>
    tpu.vector_store %arg8[%c0_87, %c0_88], %395 {strides = array<i32>} : memref<2x8xf32, #tpu.memory_space<vmem>>, vector<2x8xf32>,
    return
  }
}

</mosaic_0001>

<bundles_post_ra>
// kernel: gru_block_forward.1
= control target key start
LH: loop header
LB: loop body
LE: loop exit
PB: predicated region body
PF: predicated region fallthrough
CT: control target
= control target key end

     0   :  { %v61_v2 = vlaneseq  ;;  %v3294_v6 = vmov 1966171168   ;;  %vm124_vm0 = vcmask 1043456   ;;  %s4110_s0 = inlined_call_operand.vmem [shape: f32[2,4,8,256], index: 0, kind: input, shape index: {}]   ;;  %s4111_s1 = inlined_call_operand.vmem [shape: bf16[4,128], index: 1, kind: input, shape index: {}]   ;;  %s4112_s2 = inlined_call_operand.vmem [shape: f32[1,128], index: 2, kind: input, shape index: {}]   ;;  %s4113_s3 = inlined_call_operand.vmem [shape: bf16[32,128], index: 3, kind: input, shape index: {}]   ;;  %s4114_s4 = inlined_call_operand.vmem [shape: bf16[64,128], index: 4, kind: input, shape index: {}]   ;;  %s4115_s5 = inlined_call_operand.vmem [shape: f32[1,128], index: 5, kind: input, shape index: {}]   ;;  %s4116_s6 = inlined_call_operand.vmem [shape: bf16[32,8], index: 6, kind: input, shape index: {}]   ;;  %s4117_s7 = inlined_call_operand.vmem [shape: f32[1,8], index: 7, kind: input, shape index: {}]   ;;  %s4118_s8 = inlined_call_operand.hbm [shape: f32[2,8], index: 8, kind: output, shape index: {}]  }
   0x1   :  { %v33_v0 = vld [vmem:[%s4110_s0] ss:$8 sm:$0x3]  ;;  %v2670_v1 = vld [vmem:[%s4110_s0 + $0x10] ss:$8 sm:$0x3]  ;;  %v59_v7 = vunpack.c.l.s4 %v3294_v6 }
   0x2   :  { %v2671_v3 = vld [vmem:[%s4110_s0 + $0x20] ss:$8 sm:$0x3]  ;;  %v2672_v4 = vld [vmem:[%s4110_s0 + $0x30] ss:$8 sm:$0x3]  ;;  %v56_v10 = vcombine.low %v33_v0, %v2670_v1 }
   0x3   :  { %v3360_v5 = vshrl.u32 %v61_v2, 7  ;;  %v2688_v8 = vld [vmem:[%s4110_s0 + $0x2] ss:$8 sm:$0x3]  ;;  %v57_v13 = vcombine.low %v2671_v3, %v2672_v4  ;;  %v60_v14 = vunpack.c.0.s8 %v59_v7 }
   0x4   :  { %v2689_v9 = vld [vmem:[%s4110_s0 + $0x12] ss:$8 sm:$0x3]  ;;  %v2690_v11 = vld [vmem:[%s4110_s0 + $0x22] ss:$8 sm:$0x3] }
   0x5   :  { %v2691_v12 = vld [vmem:[%s4110_s0 + $0x32] ss:$8 sm:$0x3]  ;;  %v393_v15 = vcombine.low %v2688_v8, %v2689_v9  ;;  %v2673_v17 = vld [vmem:[%s4110_s0 + $0x40] ss:$8 sm:$0x3]  ;;  %v3387_v22 = vsub.s32 %v60_v14, %v3360_v5 }
   0x6   :  { %v394_v16 = vcombine.low %v2690_v11, %v2691_v12  ;;  %v2674_v18 = vld [vmem:[%s4110_s0 + $0x50] ss:$8 sm:$0x3]  ;;  %v2675_v19 = vld [vmem:[%s4110_s0 + $0x60] ss:$8 sm:$0x3] }
   0x7   :  { %v2676_v20 = vld [vmem:[%s4110_s0 + $0x70] ss:$8 sm:$0x3]  ;;  %v88_v21 = vcombine.low %v2673_v17, %v2674_v18  ;;  %v2692_v24 = vld [vmem:[%s4110_s0 + $0x42] ss:$8 sm:$0x3]  ;;  %v64_v29 = vrot.slane %v56_v10, %v3387_v22  ;;  %v71_v30 = vrot.slane %v57_v13, %v3387_v22  ;;  %v401_v31 = vrot.slane %v393_v15, %v3387_v22 }
   0x8   :  { %v89_v23 = vcombine.low %v2675_v19, %v2676_v20  ;;  %v2693_v25 = vld [vmem:[%s4110_s0 + $0x52] ss:$8 sm:$0x3]  ;;  %v2694_v26 = vld [vmem:[%s4110_s0 + $0x62] ss:$8 sm:$0x3]  ;;  %v408_v32 = vrot.slane %v394_v16, %v3387_v22 }
   0x9   :  { %v2695_v27 = vld [vmem:[%s4110_s0 + $0x72] ss:$8 sm:$0x3]  ;;  %v425_v28 = vcombine.low %v2692_v24, %v2693_v25  ;;  %v2710_v33 = vld [vmem:[%s4110_s0 + $0x44] ss:$8 sm:$0x3]  ;;  %v96_v35 = vrot.slane %v88_v21, %v3387_v22  ;;  %v72_v39 = vcombine.low %v64_v29, %v71_v30  ;;  %v73_v40 = vcombine.high %v64_v29, %v71_v30 }
   0xa   :  { %v2711_v34 = vld [vmem:[%s4110_s0 + $0x54] ss:$8 sm:$0x3]  ;;  %v103_v36 = vrot.slane %v89_v23, %v3387_v22  ;;  %v426_v37 = vcombine.low %v2694_v26, %v2695_v27  ;;  %v409_v41 = vcombine.low %v401_v31, %v408_v32  ;;  %v410_v42 = vcombine.high %v401_v31, %v408_v32  ;;  %v2712_v46 = vld [vmem:[%s4110_s0 + $0x64] ss:$8 sm:$0x3] }
   0xb   :  { %v433_v38 = vrot.slane %v425_v28, %v3387_v22  ;;  %v2713_v47 = vld [vmem:[%s4110_s0 + $0x74] ss:$8 sm:$0x3]  ;;  %v747_v48 = vcombine.low %v2710_v33, %v2711_v34  ;;  %v80_v49 = vrot.slane %v72_v39, %v3387_v22  ;;  %v87_v50 = vrot.slane %v73_v40, %v3387_v22  ;;  %v2706_v53 = vld [vmem:[%s4110_s0 + $0x4] ss:$8 sm:$0x3] }
   0xc   :  { %v104_v43 = vcombine.low %v96_v35, %v103_v36  ;;  %v105_v44 = vcombine.high %v96_v35, %v103_v36  ;;  %v440_v45 = vrot.slane %v426_v37, %v3387_v22  ;;  %v417_v51 = vrot.slane %v409_v41, %v3387_v22  ;;  %v2707_v54 = vld [vmem:[%s4110_s0 + $0x14] ss:$8 sm:$0x3]  ;;  %v2708_v55 = vld [vmem:[%s4110_s0 + $0x24] ss:$8 sm:$0x3] }
   0xd   :  { %v424_v52 = vrot.slane %v410_v42, %v3387_v22  ;;  %v2709_v56 = vld [vmem:[%s4110_s0 + $0x34] ss:$8 sm:$0x3]  ;;  %v2728_v61 = vld [vmem:[%s4110_s0 + $0x46] ss:$8 sm:$0x3]  ;;  %v748_v14 = vcombine.low %v2712_v46, %v2713_v47  ;;  %v755_v17 = vrot.slane %v747_v48, %v3387_v22  ;;  %v715_v18 = vcombine.low %v2706_v53, %v2707_v54 }
   0xe   :  { %v112_v57 = vrot.slane %v104_v43, %v3387_v22  ;;  %v119_v58 = vrot.slane %v105_v44, %v3387_v22  ;;  %v441_v59 = vcombine.low %v433_v38, %v440_v45  ;;  %v442_v60 = vcombine.high %v433_v38, %v440_v45  ;;  %v2729_v62 = vld [vmem:[%s4110_s0 + $0x56] ss:$8 sm:$0x3]  ;;  %v2730_v4 = vld [vmem:[%s4110_s0 + $0x66] ss:$8 sm:$0x3] }
   0xf   :  { %v125_v63 = vsel %vm124_vm0, %v80_v49, -inf  ;;  %v126_v0 = vsel %vm124_vm0, %v87_v50, -inf  ;;  %v461_v1 = vsel %vm124_vm0, %v417_v51, -inf  ;;  %v462_v3 = vsel %vm124_vm0, %v424_v52, -inf }
  0x10   :  { %v127_v6 = vmax.f32 %v125_v63, %v126_v0  ;;  %v463_v7 = vmax.f32 %v461_v1, %v462_v3  ;;  %v130_v8 = vsel %vm124_vm0, %v112_v57, -inf  ;;  %v131_v9 = vsel %vm124_vm0, %v119_v58, -inf  ;;  %v2731_v10 = vld [vmem:[%s4110_s0 + $0x76] ss:$8 sm:$0x3] }
  0x11   :  { %v132_v11 = vmax.f32 %v130_v8, %v131_v9  ;;  %v449_v12 = vrot.slane %v441_v59, %v3387_v22  ;;  %v456_v13 = vrot.slane %v442_v60, %v3387_v22  ;;  %v2724_v15 = vld [vmem:[%s4110_s0 + $0x6] ss:$8 sm:$0x3]  ;;  %v2725_v16 = vld [vmem:[%s4110_s0 + $0x16] ss:$8 sm:$0x3]  ;;  %v716_v19 = vcombine.low %v2708_v55, %v2709_v56 }
  0x12   :  { %128 = vmax.xlane.f32.xlu0 %v127_v6  ;;  %464 = vmax.xlane.f32.xlu1 %v463_v7  ;;  %v2726_v20 = vld [vmem:[%s4110_s0 + $0x26] ss:$8 sm:$0x3]  ;;  %v2727_v21 = vld [vmem:[%s4110_s0 + $0x36] ss:$8 sm:$0x3]  ;;  %v762_v26 = vrot.slane %v748_v14, %v3387_v22  ;;  %v1069_v27 = vcombine.low %v2728_v61, %v2729_v62  ;;  %v723_v29 = vrot.slane %v715_v18, %v3387_v22 }
  0x13   :  { %v148_v23 = vand.u32 127, %v61_v2  ;;  %v466_v24 = vsel %vm124_vm0, %v449_v12, -inf  ;;  %v467_v25 = vsel %vm124_vm0, %v456_v13, -inf  ;;  %v730_v30 = vrot.slane %v716_v19, %v3387_v22 }
  0x14   :  { %v468_v28 = vmax.f32 %v466_v24, %v467_v25  ;;  %v1070_v31 = vcombine.low %v2730_v4, %v2731_v10  ;;  %v763_v32 = vcombine.low %v755_v17, %v762_v26  ;;  %v764_v33 = vcombine.high %v755_v17, %v762_v26 }
  0x15   :  { %v1077_v34 = vrot.slane %v1069_v27, %v3387_v22  ;;  %v1037_v35 = vcombine.low %v2724_v15, %v2725_v16  ;;  %v731_v2 = vcombine.low %v723_v29, %v730_v30  ;;  %v732_v36 = vcombine.high %v723_v29, %v730_v30 }
  0x16   :  { %133 = vmax.xlane.f32.xlu0 %v132_v11  ;;  %469 = vmax.xlane.f32.xlu1 %v468_v28  ;;  %v1084_v37 = vrot.slane %v1070_v31, %v3387_v22  ;;  %v771_v38 = vrot.slane %v763_v32, %v3387_v22  ;;  %v778_v39 = vrot.slane %v764_v33, %v3387_v22 }
  0x17   :  { %v1038_v40 = vcombine.low %v2726_v20, %v2727_v21  ;;  %v1045_v41 = vrot.slane %v1037_v35, %v3387_v22 }
  0x18   :  { %13 = vsyncpa [#allocation3], 0  ;;  %v739_v42 = vrot.slane %v731_v2, %v3387_v22  ;;  %v746_v43 = vrot.slane %v732_v36, %v3387_v22  ;;  %v1085_v44 = vcombine.low %v1077_v34, %v1084_v37  ;;  %v1086_v45 = vcombine.high %v1077_v34, %v1084_v37  ;;  %v31_v1 = vld [vmem:[%s4111_s1] sm:$0x3]  ;;  %s3298_s10 = smov 32   ;;  %s3299_s16 = smov 64  }
  0x19   :  { %v788_v46 = vsel %vm124_vm0, %v771_v38, -inf  ;;  %v789_v47 = vsel %vm124_vm0, %v778_v39, -inf  ;;  %v1052_v48 = vrot.slane %v1038_v40, %v3387_v22  ;;  %v3489_v49 = vsub.s32 %v148_v23, %v3360_v5 }
  0x1a   :  { %v790_v50 = vmax.f32 %v788_v46, %v789_v47  ;;  %v783_v51 = vsel %vm124_vm0, %v739_v42, -inf  ;;  %v784_v52 = vsel %vm124_vm0, %v746_v43, -inf  ;;  %v1093_v53 = vrot.slane %v1085_v44, %v3387_v22  ;;  %v3546_v46 = vld [vmem:[%s4113_s3] sm:$0xff]   ;;  %v3553_v47 = vld [vmem:[%s4113_s3 + $0x8] sm:$0xff]  }
  0x1b   :  { %v785_v54 = vmax.f32 %v783_v51, %v784_v52  ;;  %v1100_v55 = vrot.slane %v1086_v45, %v3387_v22  ;;  %v1053_v56 = vcombine.low %v1045_v41, %v1052_v48  ;;  %v1054_v57 = vcombine.high %v1045_v41, %v1052_v48 }
  0x1c   :  { %791 = vmax.xlane.f32.xlu1 %v790_v50  ;;  %v1110_v58 = vsel %vm124_vm0, %v1093_v53, -inf  ;;  %vm164_vm1 = vcmask 1041408   ;;  %v3295_v3 = vmov 0.0   ;;  %vm3296_vm2 = vmmov 0   ;;  %v3565_v50 = vld [vmem:[%s4112_s2] ss:$0 sm:$0xff] }
  0x1d   :  { %786 = vmax.xlane.f32.xlu0 %v785_v54  ;;  %v1111_v59 = vsel %vm124_vm0, %v1100_v55, -inf  ;;  %v1061_v5 = vrot.slane %v1053_v56, %v3387_v22  ;;  %v1068_v60 = vrot.slane %v1054_v57, %v3387_v22  ;;  %2867 = vmatprep.subr.bf16.mxu0 %v3295_v3  ;;  %v3505_v4 = vsel %vm164_vm1, %v31_v1, 0  ;;  %v2683_v57 = vld [vmem:[%s4110_s0 + $0x41] ss:$8 sm:$0x3] }
  0x1e   :  { %v1112_v61 = vmax.f32 %v1110_v58, %v1111_v59  ;;  %2873 = vmatprep.subr.bf16.mxu1 %v3295_v3  ;;  %2868 = vmatpush3.bf16.msra.mxu0 %v3505_v4  ;;  %vm157_vm3 = vcmask 1041409   ;;  %vm160_vm4 = vcmask 31744   ;;  %v3297_v48 = vmov 0   ;;  %v2684_v58 = vld [vmem:[%s4110_s0 + $0x51] ss:$8 sm:$0x3] }
  0x1f   :  { %v1105_v62 = vsel %vm124_vm0, %v1061_v5, -inf  ;;  %v1106_v63 = vsel %vm124_vm0, %v1068_v60, -inf  ;;  %2874 = vmatpush3.bf16.msra.mxu1 %v3505_v4  ;;  %2879 = vmatprep.subr.bf16.mxu0 %v3295_v3  ;;  %v2685_v59 = vld [vmem:[%s4110_s0 + $0x61] ss:$8 sm:$0x3]  ;;  %v264_v60 = vcombine.low %v2683_v57, %v2684_v58  ;;  %vm1360_vm5 = vcmask 261120  }
  0x20   :  { %1113 = vmax.xlane.f32.xlu1 %v1112_v61  ;;  %v1107_v0 = vmax.f32 %v1105_v62, %v1106_v63  ;;  %2885 = vmatprep.subr.bf16.mxu1 %v3295_v3  ;;  %v2686_v5 = vld [vmem:[%s4110_s0 + $0x71] ss:$8 sm:$0x3]  ;;  %vm1465_vm6 = vcmask 523264   ;;  %vm2654_vm7 = vcmask 58368  }
  0x21   :  { %2869 = vmatprep.mubr.msk.bf16.mxu0 %vm3296_vm2, %v3295_v3  ;;  %2875 = vmatprep.mubr.msk.bf16.mxu1 %vm3296_vm2, %v3295_v3  ;;  %v265_v61 = vcombine.low %v2685_v59, %v2686_v5  ;;  %v272_v62 = vrot.slane %v264_v60, %v3387_v22 }
  0x22   :  { %1108 = vmax.xlane.f32.xlu0 %v1107_v0 }
  0x23   :  { %v279_v63 = vrot.slane %v265_v61, %v3387_v22 }
  0x25   :  { %v280_v0 = vcombine.low %v272_v62, %v279_v63  ;;  %v281_v1 = vcombine.high %v272_v62, %v279_v63 }
  0x9f   :  { %v129_v6 = vpop.xlane.xlu0 %128  ;;  %v465_v7 = vpop.xlane.xlu1 %464 }
  0xa0   :  { %v135_v8 = vpack.c.bf16 %v129_v6, %v129_v6  ;;  %v471_v12 = vpack.c.bf16 %v465_v7, %v465_v7  ;;  %v288_v6 = vrot.slane %v280_v0, %v3387_v22  ;;  %v295_v7 = vrot.slane %v281_v1, %v3387_v22 }
  0xa2   :  { %v145_v11 = vunpack.c.l.b16 %v135_v8  ;;  %v475_v17 = vunpack.c.l.b16 %v471_v12  ;;  %v305_v8 = vsel %vm124_vm0, %v288_v6, -inf }
  0xa3   :  { %v134_v9 = vpop.xlane.xlu0 %133  ;;  %v470_v10 = vpop.xlane.xlu1 %469 }
  0xa4   :  { %v136_v13 = vpack.c.bf16 %v134_v9, %v134_v9  ;;  %v472_v14 = vpack.c.bf16 %v470_v10, %v470_v10  ;;  %v152_v16 = vrot.slane %v145_v11, %v3489_v49  ;;  %v480_v27 = vrot.slane %v475_v17, %v3489_v49  ;;  %v2697_v17 = vld [vmem:[%s4110_s0 + $0x3] ss:$8 sm:$0x3] }
  0xa5   :  { %v306_v9 = vsel %vm124_vm0, %v295_v7, -inf }
  0xa6   :  { %v146_v15 = vunpack.c.l.b16 %v136_v13  ;;  %v476_v19 = vunpack.c.l.b16 %v472_v14  ;;  %v307_v10 = vmax.f32 %v305_v8, %v306_v9 }
  0xa8   :  { %v156_v18 = vrot.slane %v146_v15, %v3489_v49  ;;  %v484_v28 = vrot.slane %v476_v19, %v3489_v49  ;;  %v2699_v19 = vld [vmem:[%s4110_s0 + $0x23] ss:$8 sm:$0x3] }
  0xa9   :  { %v792_v20 = vpop.xlane.xlu1 %791 }
  0xaa   :  { %v158_v21 = vsel %vm157_vm3, %v156_v18, %v152_v16  ;;  %v794_v23 = vpack.c.bf16 %v792_v20, %v792_v20  ;;  %v787_v24 = vpop.xlane.xlu0 %786  ;;  %v485_v33 = vsel %vm157_vm3, %v484_v28, %v480_v27  ;;  %v2698_v18 = vld [vmem:[%s4110_s0 + $0x13] ss:$8 sm:$0x3]  ;;  %v2703_v27 = vld [vmem:[%s4110_s0 + $0x63] ss:$8 sm:$0x3] }
  0xab   :  { %v159_v25 = vpack.c.b16 %v158_v21, %v158_v21  ;;  %v793_v26 = vpack.c.bf16 %v787_v24, %v787_v24  ;;  %v486_v37 = vpack.c.b16 %v485_v33, %v485_v33  ;;  %v2700_v20 = vld [vmem:[%s4110_s0 + $0x33] ss:$8 sm:$0x3]  ;;  %v554_v21 = vcombine.low %v2697_v17, %v2698_v18  ;;  %v2701_v24 = vld [vmem:[%s4110_s0 + $0x43] ss:$8 sm:$0x3] }
  0xac   :  { %v798_v29 = vunpack.c.l.b16 %v794_v23  ;;  %v555_v23 = vcombine.low %v2699_v19, %v2700_v20  ;;  %v2704_v28 = vld [vmem:[%s4110_s0 + $0x73] ss:$8 sm:$0x3]  ;;  %v2720_v33 = vld [vmem:[%s4110_s0 + $0x55] ss:$8 sm:$0x3] }
  0xad   :  { %2870 = vmatmul.mubr.msk.bf16.vlgmr.msra.gmra.mrb[0].mxu0 %vm160_vm4, %v159_v25  ;;  %v797_v30 = vunpack.c.l.b16 %v793_v26  ;;  %v1114_v31 = vpop.xlane.xlu1 %1113  ;;  %v2702_v25 = vld [vmem:[%s4110_s0 + $0x53] ss:$8 sm:$0x3]  ;;  %v562_v26 = vrot.slane %v554_v21, %v3387_v22  ;;  %v2737_v21 = vld [vmem:[%s4110_s0 + $0x47] ss:$8 sm:$0x3] }
  0xae   :  { %2880 = vmatpush3.bf16.msra.mxu0 %v3505_v4  ;;  %2881 = vmatprep.mubr.msk.bf16.mxu0 %vm3296_vm2, %v3295_v3  ;;  %v806_v34 = vrot.slane %v798_v29, %v3489_v49  ;;  %v1116_v2 = vpack.c.bf16 %v1114_v31, %v1114_v31  ;;  %v586_v29 = vcombine.low %v2701_v24, %v2702_v25  ;;  %v2739_v24 = vld [vmem:[%s4110_s0 + $0x67] ss:$8 sm:$0x3]  ;;  %v2740_v25 = vld [vmem:[%s4110_s0 + $0x77] ss:$8 sm:$0x3] }
  0xaf   :  { %2891 = vmatprep.subr.bf16.mxu0 %v3295_v3  ;;  %v1109_v32 = vpop.xlane.xlu0 %1108  ;;  %v802_v35 = vrot.slane %v797_v30, %v3489_v49  ;;  %v569_v30 = vrot.slane %v555_v23, %v3387_v22  ;;  %v587_v31 = vcombine.low %v2703_v27, %v2704_v28  ;;  %v2738_v23 = vld [vmem:[%s4110_s0 + $0x57] ss:$8 sm:$0x3]  ;;  %v1231_v27 = vcombine.low %v2739_v24, %v2740_v25 }
  0xb0   :  { %v1115_v36 = vpack.c.bf16 %v1109_v32, %v1109_v32  ;;  %v1120_v39 = vunpack.c.l.b16 %v1116_v2  ;;  %v2719_v32 = vld [vmem:[%s4110_s0 + $0x45] ss:$8 sm:$0x3]  ;;  %v2722_v2 = vld [vmem:[%s4110_s0 + $0x75] ss:$8 sm:$0x3] }
  0xb1   :  { %v807_v38 = vsel %vm157_vm3, %v806_v34, %v802_v35  ;;  %v594_v34 = vrot.slane %v586_v29, %v3387_v22  ;;  %v2721_v35 = vld [vmem:[%s4110_s0 + $0x65] ss:$8 sm:$0x3]  ;;  %v1245_v29 = vrot.slane %v1231_v27, %v3387_v22 }
  0xb2   :  { %v1119_v40 = vunpack.c.l.b16 %v1115_v36  ;;  %v808_v41 = vpack.c.b16 %v807_v38, %v807_v38  ;;  %v1128_v42 = vrot.slane %v1120_v39, %v3489_v49  ;;  %v908_v36 = vcombine.low %v2719_v32, %v2720_v33 }
  0xb3   :  { %v571_v38 = vcombine.high %v562_v26, %v569_v30  ;;  %v601_v39 = vrot.slane %v587_v31, %v3387_v22 }
  0xb4   :  { %v1124_v43 = vrot.slane %v1119_v40, %v3489_v49  ;;  %v909_v40 = vcombine.low %v2721_v35, %v2722_v2 }
  0xb5   :  { %2882 = vmatmul.mubr.msk.bf16.vlgmr.msra.gmra.mrb[4].mxu0 %vm160_vm4, %v486_v37  ;;  %v570_v37 = vcombine.low %v562_v26, %v569_v30  ;;  %v1230_v26 = vcombine.low %v2737_v21, %v2738_v23 }
  0xb6   :  { %2892 = vmatpush3.bf16.msra.mxu0 %v3505_v4  ;;  %2893 = vmatprep.mubr.msk.bf16.mxu0 %vm3296_vm2, %v3295_v3  ;;  %v1129_v44 = vsel %vm157_vm3, %v1128_v42, %v1124_v43  ;;  %v2679_v42 = vld [vmem:[%s4110_s0 + $0x1] ss:$8 sm:$0x3] }
  0xb7   :  { %2903 = vmatprep.subr.bf16.mxu0 %v3295_v3  ;;  %v1130_v45 = vpack.c.b16 %v1129_v44, %v1129_v44  ;;  %v578_v43 = vrot.slane %v570_v37, %v3387_v22  ;;  %v585_v44 = vrot.slane %v571_v38, %v3387_v22  ;;  %v1238_v28 = vrot.slane %v1230_v26, %v3387_v22 }
  0xb9   :  { %v1246_v30 = vcombine.low %v1238_v28, %v1245_v29  ;;  %v1247_v31 = vcombine.high %v1238_v28, %v1245_v29 }
  0xbb   :  { %v1254_v32 = vrot.slane %v1246_v30, %v3387_v22  ;;  %v1261_v33 = vrot.slane %v1247_v31, %v3387_v22 }
  0xbd   :  { %2894 = vmatmul.mubr.msk.bf16.vlgmr.msra.gmra.mrb[8].mxu0 %vm160_vm4, %v808_v41  ;;  %v916_v41 = vrot.slane %v908_v36, %v3387_v22  ;;  %v1272_v35 = vsel %vm124_vm0, %v1261_v33, -inf }
  0xbe   :  { %2904 = vmatpush3.bf16.msra.mxu0 %v3505_v4  ;;  %2905 = vmatprep.mubr.msk.bf16.mxu0 %vm3296_vm2, %v3295_v3 }
  0xbf   :  { %2915 = vmatprep.subr.bf16.mxu0 %v3295_v3 }
  0xc5   :  { %2906 = vmatmul.mubr.msk.bf16.vlgmr.msra.gmra.mrb[12].mxu0 %vm160_vm4, %v1130_v45  ;;  %v602_v45 = vcombine.low %v594_v34, %v601_v39 }
  0xc6   :  { %2916 = vmatpush3.bf16.msra.mxu0 %v3546_v46  ;;  %2919 = vmatprep.mubr.msk.bf16.mxu0 %vm3296_vm2, %v3295_v3 }
  0xc7   :  { %2917 = vmatprep.subr.bf16.mxu0 %v3295_v3  ;;  %v610_v57 = vrot.slane %v602_v45, %v3387_v22 }
  0xc9   :  { %v627_v62 = vsel %vm124_vm0, %v610_v57, -inf }
  0xca   :  { %2918 = vmatpush3.bf16.msra.mxu0 %v3553_v47 }
  0xcb   :  { %2943 = vmatprep.subr.bf16.mxu0 %v3295_v3 }
  0xcd   :  { %2920 = vmatmul.mubr.bf16.vlgmr.msra.gmra.mrb[0].mxu0 %v3297_v48  ;;  %v603_v48 = vcombine.high %v594_v34, %v601_v39  ;;  %v1271_v34 = vsel %vm124_vm0, %v1254_v32, -inf }
  0xce   :  { %2951 = vmatprep.mubr.msk.bf16.mxu0 %vm3296_vm2, %v3295_v3  ;;  %v1273_v2 = vmax.f32 %v1271_v34, %v1272_v35  ;;  %v3737_v34 = vld [vmem:[%s4114_s4] sm:$0xff]   ;;  %v3748_v35 = vld [vmem:[%s4114_s4 + $0x8] sm:$0xff]  }
  0xcf   :  { %v617_v58 = vrot.slane %v603_v48, %v3387_v22  ;;  %v2733_v48 = vld [vmem:[%s4110_s0 + $0x7] ss:$8 sm:$0x3]  ;;  %2944 = vmatpush3.bf16.msra.mxu0 %v3737_v34 }
  0xd0   :  { %2945 = vmatprep.subr.bf16.mxu0 %v3295_v3 }
  0xd1   :  { %v628_v63 = vsel %vm124_vm0, %v617_v58, -inf }
  0xd2   :  { %v629_v1 = vmax.f32 %v627_v62, %v628_v63 }
  0xd3   :  { %2946 = vmatpush3.bf16.msra.mxu0 %v3748_v35 }
  0xd4   :  { %2947 = vmatprep.subr.bf16.mxu0 %v3295_v3 }
 0x1a0   :  { %v1398_v51 = vpop.f32.mrb[0].mxu0 }
 0x1a1   :  { %v3083_v52 = vadd.f32 %v3565_v50, %v1398_v51  ;;  %v2921_v53 = vpop.f32.mrb[1].mxu0  ;;  %v2680_v51 = vld [vmem:[%s4110_s0 + $0x11] ss:$8 sm:$0x3] }
 0x1a2   :  { %v1401_v54 = vpop.f32.mrb[2].mxu0  ;;  %v923_v53 = vrot.slane %v909_v40, %v3387_v22  ;;  %v232_v61 = vcombine.low %v2679_v42, %v2680_v51  ;;  %v2715_v40 = vld [vmem:[%s4110_s0 + $0x5] ss:$8 sm:$0x3] }
 0x1a3   :  { %3139 = vtanh.f32 %v3083_v52  ;;  %v2922_v55 = vpop.f32.mrb[3].mxu0  ;;  %v2744_v11 = vmul.f32 -1.442695, %v3083_v52  ;;  %v2681_v52 = vld [vmem:[%s4110_s0 + $0x21] ss:$8 sm:$0x3] }
 0x1a4   :  { %v2682_v54 = vld [vmem:[%s4110_s0 + $0x31] ss:$8 sm:$0x3]  ;;  %v622_v55 = vsel %vm124_vm0, %v578_v43, -inf  ;;  %v924_v5 = vcombine.low %v916_v41, %v923_v53  ;;  %v925_v60 = vcombine.high %v916_v41, %v923_v53 }
 0x1a5   :  { %3141 = vpow2.f32 %v2744_v11  ;;  %v233_v0 = vcombine.low %v2681_v52, %v2682_v54  ;;  %v2716_v41 = vld [vmem:[%s4110_s0 + $0x15] ss:$8 sm:$0x3]  ;;  %v2717_v42 = vld [vmem:[%s4110_s0 + $0x25] ss:$8 sm:$0x3] }
 0x1a6   :  { %v932_v6 = vrot.slane %v924_v5, %v3387_v22  ;;  %v939_v7 = vrot.slane %v925_v60, %v3387_v22  ;;  %v2718_v43 = vld [vmem:[%s4110_s0 + $0x35] ss:$8 sm:$0x3]  ;;  %v2734_v51 = vld [vmem:[%s4110_s0 + $0x17] ss:$8 sm:$0x3] }
 0x1a7   :  { %v247_v11 = vrot.slane %v233_v0, %v3387_v22  ;;  %v877_v45 = vcombine.low %v2717_v42, %v2718_v43  ;;  %v2735_v52 = vld [vmem:[%s4110_s0 + $0x27] ss:$8 sm:$0x3]  ;;  %v2736_v53 = vld [vmem:[%s4110_s0 + $0x37] ss:$8 sm:$0x3] }
 0x1a8   :  { %v949_v8 = vsel %vm124_vm0, %v932_v6, -inf  ;;  %v950_v9 = vsel %vm124_vm0, %v939_v7, -inf  ;;  %v1199_v57 = vcombine.low %v2735_v52, %v2736_v53 }
 0x1aa   :  { %v1213_v60 = vrot.slane %v1199_v57, %v3387_v22 }
 0x1ad   :  { %v3140_v56 = vpop.eup %3139 }
 0x1ae   :  { %1414 = vrot.lane.b32.xlu0 %v3140_v56, %s3298_s10  ;;  %v623_v56 = vsel %vm124_vm0, %v585_v44, -inf  ;;  %v876_v44 = vcombine.low %v2715_v40, %v2716_v41 }
 0x1af   :  { %v3142_v12 = vpop.eup %3141  ;;  %v624_v59 = vmax.f32 %v622_v55, %v623_v56  ;;  %v891_v55 = vrot.slane %v877_v45, %v3387_v22  ;;  %v1198_v56 = vcombine.low %v2733_v48, %v2734_v51 }
 0x1b0   :  { %v1408_v13 = vadd.f32 1.0, %v3142_v12  ;;  %v951_v12 = vmax.f32 %v949_v8, %v950_v9  ;;  %v884_v54 = vrot.slane %v876_v44, %v3387_v22 }
 0x1b1   :  { %v1206_v5 = vrot.slane %v1198_v56, %v3387_v22 }
 0x1b2   :  { %3143 = vrcp.f32 %v1408_v13  ;;  %v892_v58 = vcombine.low %v884_v54, %v891_v55 }
 0x1b3   :  { %v1214_v63 = vcombine.low %v1206_v5, %v1213_v60  ;;  %v1215_v0 = vcombine.high %v1206_v5, %v1213_v60 }
 0x1b5   :  { %v1222_v7 = vrot.slane %v1214_v63, %v3387_v22  ;;  %v1229_v8 = vrot.slane %v1215_v0, %v3387_v22 }
 0x1bc   :  { %v3587_v14 = vpop.eup %3143 }
 0x1bd   :  { %v1412_v36 = vmul.f32 0.0, %v3587_v14 }
 0x1cd   :  { %308 = vmax.xlane.f32.xlu0 %v307_v10  ;;  %v240_v10 = vrot.slane %v232_v61, %v3387_v22  ;;  %v900_v61 = vrot.slane %v892_v58, %v3387_v22 }
 0x1cf   :  { %v248_v13 = vcombine.low %v240_v10, %v247_v11 }
 0x1d1   :  { %625 = vmax.xlane.f32.xlu0 %v624_v59  ;;  %v893_v59 = vcombine.high %v884_v54, %v891_v55 }
 0x1d3   :  { %v907_v62 = vrot.slane %v893_v59, %v3387_v22 }
 0x1d5   :  { %630 = vmax.xlane.f32.xlu0 %v629_v1  ;;  %v944_v1 = vsel %vm124_vm0, %v900_v61, -inf  ;;  %v945_v6 = vsel %vm124_vm0, %v907_v62, -inf }
 0x1d6   :  { %v946_v9 = vmax.f32 %v944_v1, %v945_v6  ;;  %v3813_v1 = vld [vmem:[%s4115_s5] ss:$0 sm:$0xff]  ;;  %s3300_s5 = smov 96  }
 0x1d9   :  { %952 = vmax.xlane.f32.xlu0 %v951_v12 }
 0x1dd   :  { %1274 = vmax.xlane.f32.xlu0 %v1273_v2  ;;  %v3755_v2 = vld [vmem:[%s4114_s4 + $0x10] sm:$0xff]  }
 0x1de   :  { %2948 = vmatpush3.bf16.msra.mxu0 %v3755_v2 }
 0x1df   :  { %2949 = vmatprep.subr.bf16.mxu0 %v3295_v3 }
 0x220   :  { %v1415_v15 = vpop.permute.xlu0 %1414 }
 0x221   :  { %v1417_v16 = vmul.f32 %v3587_v14, %v1415_v15  ;;  %v249_v15 = vcombine.high %v240_v10, %v247_v11  ;;  %v1266_v10 = vsel %vm124_vm0, %v1222_v7, -inf  ;;  %v1267_v11 = vsel %vm124_vm0, %v1229_v8, -inf }
 0x223   :  { %1419 = vrot.lane.b32.xlu1 %v1417_v16, %s3298_s10  ;;  %v256_v16 = vrot.slane %v248_v13, %v3387_v22  ;;  %v263_v17 = vrot.slane %v249_v15, %v3387_v22  ;;  %v1268_v13 = vmax.f32 %v1266_v10, %v1267_v11 }
 0x225   :  { %v300_v18 = vsel %vm124_vm0, %v256_v16, -inf  ;;  %v301_v19 = vsel %vm124_vm0, %v263_v17, -inf }
 0x226   :  { %v302_v20 = vmax.f32 %v300_v18, %v301_v19 }
 0x247   :  { %303 = vmax.xlane.f32.xlu1 %v302_v20 }
 0x25a   :  { %v309_v12 = vpop.xlane.xlu0 %308 }
 0x25b   :  { %v311_v16 = vpack.c.bf16 %v309_v12, %v309_v12 }
 0x25d   :  { %v315_v18 = vunpack.c.l.b16 %v311_v16 }
 0x25e   :  { %v626_v15 = vpop.xlane.xlu0 %625 }
 0x25f   :  { %v632_v19 = vpack.c.bf16 %v626_v15, %v626_v15  ;;  %v323_v24 = vrot.slane %v315_v18, %v3489_v49 }
 0x261   :  { %v636_v25 = vunpack.c.l.b16 %v632_v19 }
 0x262   :  { %v631_v17 = vpop.xlane.xlu0 %630 }
 0x263   :  { %v633_v20 = vpack.c.bf16 %v631_v17, %v631_v17  ;;  %v641_v29 = vrot.slane %v636_v25, %v3489_v49 }
 0x265   :  { %v637_v26 = vunpack.c.l.b16 %v633_v20 }
 0x266   :  { %v953_v41 = vpop.xlane.xlu0 %952 }
 0x267   :  { %v645_v30 = vrot.slane %v637_v26, %v3489_v49  ;;  %v955_v42 = vpack.c.bf16 %v953_v41, %v953_v41 }
 0x269   :  { %v646_v32 = vsel %vm157_vm3, %v645_v30, %v641_v29  ;;  %v959_v44 = vunpack.c.l.b16 %v955_v42 }
 0x26a   :  { %v647_v33 = vpack.c.b16 %v646_v32, %v646_v32  ;;  %v1275_v43 = vpop.xlane.xlu0 %1274 }
 0x26b   :  { %v1277_v45 = vpack.c.bf16 %v1275_v43, %v1275_v43  ;;  %v967_v52 = vrot.slane %v959_v44, %v3489_v49 }
 0x26d   :  { %v1281_v54 = vunpack.c.l.b16 %v1277_v45 }
 0x26f   :  { %v1289_v58 = vrot.slane %v1281_v54, %v3489_v49 }
 0x295   :  { %v1420_v37 = vpop.permute.xlu1 %1419 }
 0x296   :  { %v3682_v38 = vadd.f32 %v1420_v37, %v1412_v36  ;;  %v3762_v36 = vld [vmem:[%s4114_s4 + $0x18] sm:$0xff]  }
 0x297   :  { %2950 = vmatpush3.bf16.msra.mxu0 %v3762_v36 }
 0x298   :  { %3145 = vtanh.f32 %v3682_v38  ;;  %2955 = vmatprep.subr.bf16.mxu0 %v3295_v3 }
 0x2a2   :  { %v3146_v39 = vpop.eup %3145 }
 0x2a3   :  { %1425 = vrot.lane.b32.xlu1 %v3146_v39, %s3298_s10 }
 0x2c7   :  { %947 = vmax.xlane.f32.xlu1 %v946_v9 }
 0x2cb   :  { %1269 = vmax.xlane.f32.xlu1 %v1268_v13 }
 0x2d4   :  { %v304_v21 = vpop.xlane.xlu1 %303 }
 0x2d5   :  { %v310_v23 = vpack.c.bf16 %v304_v21, %v304_v21 }
 0x2d7   :  { %v314_v22 = vunpack.c.l.b16 %v310_v23 }
 0x2d9   :  { %v319_v27 = vrot.slane %v314_v22, %v3489_v49 }
 0x2db   :  { %v324_v28 = vsel %vm157_vm3, %v323_v24, %v319_v27 }
 0x2dc   :  { %v325_v31 = vpack.c.b16 %v324_v28, %v324_v28 }
 0x2de   :  { %2876 = vmatmul.mubr.msk.bf16.vlgmr.msra.gmra.mrb[0].mxu1 %vm160_vm4, %v325_v31 }
 0x2df   :  { %2886 = vmatpush3.bf16.msra.mxu1 %v3505_v4  ;;  %2887 = vmatprep.mubr.msk.bf16.mxu1 %vm3296_vm2, %v3295_v3 }
 0x2e0   :  { %2897 = vmatprep.subr.bf16.mxu1 %v3295_v3 }
 0x2e6   :  { %2888 = vmatmul.mubr.msk.bf16.vlgmr.msra.gmra.mrb[4].mxu1 %vm160_vm4, %v647_v33 }
 0x2e7   :  { %2898 = vmatpush3.bf16.msra.mxu1 %v3505_v4  ;;  %2899 = vmatprep.mubr.msk.bf16.mxu1 %vm3296_vm2, %v3295_v3 }
 0x2e8   :  { %2909 = vmatprep.subr.bf16.mxu1 %v3295_v3 }
 0x315   :  { %v1426_v37 = vpop.permute.xlu1 %1425 }
 0x316   :  { %v1428_v39 = vmul.f32 %v3587_v14, %v1426_v37 }
 0x318   :  { %v1534_v40 = vpack.c.bf16 %v1428_v39, %v1428_v39  ;;  %1430 = vrot.lane.b32.xlu1 %v1428_v39, %s3299_s16 }
 0x31a   :  { %1536 = vrot.lane.b32.xlu0 %v1534_v40, %s3299_s16 }
 0x354   :  { %v948_v48 = vpop.xlane.xlu1 %947 }
 0x355   :  { %v954_v51 = vpack.c.bf16 %v948_v48, %v948_v48 }
 0x357   :  { %v958_v53 = vunpack.c.l.b16 %v954_v51 }
 0x358   :  { %v1270_v55 = vpop.xlane.xlu1 %1269 }
 0x359   :  { %v963_v14 = vrot.slane %v958_v53, %v3489_v49  ;;  %v1276_v56 = vpack.c.bf16 %v1270_v55, %v1270_v55 }
 0x35b   :  { %v968_v57 = vsel %vm157_vm3, %v967_v52, %v963_v14  ;;  %v1280_v59 = vunpack.c.l.b16 %v1276_v56 }
 0x35c   :  { %v969_v5 = vpack.c.b16 %v968_v57, %v968_v57 }
 0x35d   :  { %v1285_v60 = vrot.slane %v1280_v59, %v3489_v49 }
 0x35e   :  { %2900 = vmatmul.mubr.msk.bf16.vlgmr.msra.gmra.mrb[8].mxu1 %vm160_vm4, %v969_v5 }
 0x35f   :  { %v1290_v61 = vsel %vm157_vm3, %v1289_v58, %v1285_v60  ;;  %2910 = vmatpush3.bf16.msra.mxu1 %v3505_v4  ;;  %2911 = vmatprep.mubr.msk.bf16.mxu1 %vm3296_vm2, %v3295_v3 }
 0x360   :  { %2923 = vmatprep.subr.bf16.mxu1 %v3295_v3  ;;  %v1291_v62 = vpack.c.b16 %v1290_v61, %v1290_v61 }
 0x366   :  { %2912 = vmatmul.mubr.msk.bf16.vlgmr.msra.gmra.mrb[12].mxu1 %vm160_vm4, %v1291_v62 }
 0x367   :  { %2924 = vmatpush3.bf16.msra.mxu1 %v3737_v34  ;;  %2931 = vmatprep.mubr.msk.bf16.mxu1 %vm3296_vm2, %v3295_v3 }
 0x368   :  { %2925 = vmatprep.subr.bf16.mxu1 %v3295_v3 }
 0x36b   :  { %2926 = vmatpush3.bf16.msra.mxu1 %v3748_v35 }
 0x36c   :  { %2927 = vmatprep.subr.bf16.mxu1 %v3295_v3 }
 0x36f   :  { %2928 = vmatpush3.bf16.msra.mxu1 %v3755_v2 }
 0x370   :  { %2929 = vmatprep.subr.bf16.mxu1 %v3295_v3 }
 0x373   :  { %2930 = vmatpush3.bf16.msra.mxu1 %v3762_v36 }
 0x374   :  { %2935 = vmatprep.subr.bf16.mxu1 %v3295_v3 }
 0x38a   :  { %v1431_v49 = vpop.permute.xlu1 %1430 }
 0x38b   :  { %v1433_v4 = vsel %vm1360_vm5, %v1431_v49, 0.0 }
 0x38c   :  { %v1434_v63 = vpack.c.bf16 %v1433_v4, %v1433_v4  ;;  %v1537_v0 = vpop.permute.xlu0 %1536 }
 0x38e   :  { %2932 = vmatmul.mubr.msk.bf16.vlgmr.msra.gmra.mrb[16].mxu1 %vm1465_vm6, %v1434_v63 }
 0x38f   :  { %2936 = vmatpush3.bf16.msra.mxu1 %v3546_v46  ;;  %2939 = vmatprep.mubr.msk.bf16.mxu1 %vm3296_vm2, %v3295_v3 }
 0x390   :  { %2937 = vmatprep.subr.bf16.mxu1 %v3295_v3 }
 0x393   :  { %2938 = vmatpush3.bf16.msra.mxu1 %v3553_v47 }
 0x394   :  { %2963 = vmatprep.subr.bf16.mxu1 %v3295_v3 }
 0x396   :  { %2940 = vmatmul.mubr.msk.bf16.vlgmr.msra.gmra.mrb[0].mxu1 %vm1360_vm5, %v1537_v0 }
 0x397   :  { %2964 = vmatpush3.bf16.msra.mxu1 %v3737_v34  ;;  %2971 = vmatprep.mubr.msk.bf16.mxu1 %vm3296_vm2, %v3295_v3 }
 0x398   :  { %2965 = vmatprep.subr.bf16.mxu1 %v3295_v3 }
 0x39b   :  { %2966 = vmatpush3.bf16.msra.mxu1 %v3748_v35 }
 0x39c   :  { %2967 = vmatprep.subr.bf16.mxu1 %v3295_v3 }
 0x39f   :  { %2968 = vmatpush3.bf16.msra.mxu1 %v3755_v2 }
 0x3a0   :  { %2969 = vmatprep.subr.bf16.mxu1 %v3295_v3 }
 0x3a3   :  { %2970 = vmatpush3.bf16.msra.mxu1 %v3762_v36 }
 0x3a4   :  { %2975 = vmatprep.subr.bf16.mxu1 %v3295_v3 }
 0x461   :  { %v1503_v6 = vpop.f32.mrb[16].mxu1 }
 0x462   :  { %v1504_v7 = vadd.f32 %v3813_v1, %v1503_v6  ;;  %v2933_v8 = vpop.f32.mrb[17].mxu1 }
 0x463   :  { %v1506_v9 = vpop.f32.mrb[18].mxu1 }
 0x464   :  { %3147 = vtanh.f32 %v1504_v7  ;;  %v2934_v10 = vpop.f32.mrb[19].mxu1  ;;  %v2751_v19 = vmul.f32 -1.442695, %v1504_v7 }
 0x469   :  { %v1575_v11 = vpop.f32.mrb[0].mxu1 }
 0x46a   :  { %v3084_v12 = vadd.f32 %v3565_v50, %v1575_v11  ;;  %v2941_v13 = vpop.f32.mrb[1].mxu1 }
 0x46b   :  { %v1578_v15 = vpop.f32.mrb[2].mxu1 }
 0x46c   :  { %3149 = vtanh.f32 %v3084_v12  ;;  %v2942_v16 = vpop.f32.mrb[3].mxu1  ;;  %v2753_v20 = vmul.f32 -1.442695, %v3084_v12 }
 0x46d   :  { %3151 = vpow2.f32 %v2751_v19 }
 0x46e   :  { %v3148_v17 = vpop.eup %3147  ;;  %3153 = vpow2.f32 %v2753_v20 }
 0x46f   :  { %1518 = vrot.lane.b32.xlu1 %v3148_v17, %s3298_s10 }
 0x476   :  { %v3150_v18 = vpop.eup %3149 }
 0x477   :  { %1591 = vrot.lane.b32.xlu1 %v3150_v18, %s3298_s10  ;;  %v3152_v21 = vpop.eup %3151 }
 0x478   :  { %v1512_v23 = vadd.f32 1.0, %v3152_v21  ;;  %v3154_v24 = vpop.eup %3153 }
 0x479   :  { %v1585_v22 = vadd.f32 1.0, %v3154_v24 }
 0x47a   :  { %3155 = vrcp.f32 %v1512_v23 }
 0x47b   :  { %3157 = vrcp.f32 %v1585_v22 }
 0x484   :  { %v3156_v25 = vpop.eup %3155 }
 0x485   :  { %v3158_v28 = vpop.eup %3157  ;;  %v1516_v31 = vmul.f32 0.0, %v3156_v25 }
 0x486   :  { %v1589_v37 = vmul.f32 %v3158_v28, %v3682_v38 }
 0x4e1   :  { %v1519_v26 = vpop.permute.xlu1 %1518 }
 0x4e2   :  { %v1521_v27 = vmul.f32 %v3156_v25, %v1519_v26 }
 0x4e4   :  { %1523 = vrot.lane.b32.xlu1 %v1521_v27, %s3298_s10 }
 0x4e9   :  { %v1592_v29 = vpop.permute.xlu1 %1591 }
 0x4ea   :  { %v1594_v30 = vmul.f32 %v3158_v28, %v1592_v29 }
 0x4ec   :  { %1596 = vrot.lane.b32.xlu0 %v1594_v30, %s3298_s10 }
 0x556   :  { %v1524_v32 = vpop.permute.xlu1 %1523 }
 0x557   :  { %v3821_v33 = vadd.f32 %v1524_v32, %v1516_v31 }
 0x559   :  { %3159 = vtanh.f32 %v3821_v33 }
 0x55e   :  { %v1597_v39 = vpop.permute.xlu0 %1596 }
 0x55f   :  { %v3825_v40 = vadd.f32 %v1597_v39, %v1589_v37 }
 0x561   :  { %3161 = vtanh.f32 %v3825_v40 }
 0x563   :  { %v3160_v41 = vpop.eup %3159 }
 0x564   :  { %1529 = vrot.lane.b32.xlu1 %v3160_v41, %s3298_s10 }
 0x56b   :  { %v3162_v42 = vpop.eup %3161 }
 0x56c   :  { %1602 = vrot.lane.b32.xlu0 %v3162_v42, %s3298_s10 }
 0x5d6   :  { %v1530_v43 = vpop.permute.xlu1 %1529 }
 0x5d7   :  { %v3830_v44 = vmul.f32 %v3156_v25, %v1530_v43 }
 0x5d9   :  { %1611 = vrot.lane.b32.xlu0 %v3830_v44, %s3300_s5 }
 0x5de   :  { %v1603_v45 = vpop.permute.xlu0 %1602 }
 0x5df   :  { %v1605_v38 = vmul.f32 %v3158_v28, %v1603_v45 }
 0x5e1   :  { %1607 = vrot.lane.b32.xlu1 %v1605_v38, %s3299_s16  ;;  %v1684_v48 = vpack.c.bf16 %v1605_v38, %v1605_v38 }
 0x5e5   :  { %1686 = vrot.lane.b32.xlu1 %v1684_v48, %s3299_s16 }
 0x64b   :  { %v1612_v51 = vpop.permute.xlu0 %1611 }
 0x653   :  { %v1608_v52 = vpop.permute.xlu1 %1607 }
 0x654   :  { %v1614_v53 = vsel %vm1360_vm5, %v1608_v52, %v1612_v51 }
 0x655   :  { %v1615_v54 = vpack.c.bf16 %v1614_v53, %v1614_v53 }
 0x657   :  { %2952 = vmatmul.mubr.msk.bf16.vlgmr.msra.gmra.mrb[16].mxu0 %vm1465_vm6, %v1615_v54  ;;  %v1687_v55 = vpop.permute.xlu1 %1686 }
 0x658   :  { %2956 = vmatpush3.bf16.msra.mxu0 %v3546_v46  ;;  %2959 = vmatprep.mubr.msk.bf16.mxu0 %vm3296_vm2, %v3295_v3 }
 0x659   :  { %2957 = vmatprep.subr.bf16.mxu0 %v3295_v3 }
 0x65c   :  { %2958 = vmatpush3.bf16.msra.mxu0 %v3553_v47 }
 0x65d   :  { %2983 = vmatprep.subr.bf16.mxu0 %v3295_v3 }
 0x65f   :  { %2960 = vmatmul.mubr.msk.bf16.vlgmr.msra.gmra.mrb[4].mxu0 %vm1360_vm5, %v1687_v55 }
 0x660   :  { %2984 = vmatpush3.bf16.msra.mxu0 %v3737_v34  ;;  %2991 = vmatprep.mubr.msk.bf16.mxu0 %vm3296_vm2, %v3295_v3 }
 0x661   :  { %2985 = vmatprep.subr.bf16.mxu0 %v3295_v3 }
 0x664   :  { %2986 = vmatpush3.bf16.msra.mxu0 %v3748_v35 }
 0x665   :  { %2987 = vmatprep.subr.bf16.mxu0 %v3295_v3 }
 0x668   :  { %2988 = vmatpush3.bf16.msra.mxu0 %v3755_v2 }
 0x669   :  { %2989 = vmatprep.subr.bf16.mxu0 %v3295_v3 }
 0x66c   :  { %2990 = vmatpush3.bf16.msra.mxu0 %v3762_v36 }
 0x66d   :  { %2995 = vmatprep.subr.bf16.mxu0 %v3295_v3 }
 0x72a   :  { %v1653_v14 = vpop.f32.mrb[16].mxu0 }
 0x72b   :  { %v1654_v56 = vadd.f32 %v3813_v1, %v1653_v14  ;;  %v2953_v57 = vpop.f32.mrb[17].mxu0 }
 0x72c   :  { %v1656_v58 = vpop.f32.mrb[18].mxu0 }
 0x72d   :  { %3163 = vtanh.f32 %v1654_v56  ;;  %v2954_v59 = vpop.f32.mrb[19].mxu0  ;;  %v2755_v0 = vmul.f32 -1.442695, %v1654_v56 }
 0x732   :  { %v1725_v5 = vpop.f32.mrb[4].mxu0 }
 0x733   :  { %v3085_v60 = vadd.f32 %v3565_v50, %v1725_v5  ;;  %v2961_v61 = vpop.f32.mrb[5].mxu0 }
 0x734   :  { %v1728_v62 = vpop.f32.mrb[6].mxu0 }
 0x735   :  { %3165 = vtanh.f32 %v3085_v60  ;;  %v2962_v49 = vpop.f32.mrb[7].mxu0  ;;  %v2757_v6 = vmul.f32 -1.442695, %v3085_v60 }
 0x736   :  { %3167 = vpow2.f32 %v2755_v0 }
 0x737   :  { %v3164_v4 = vpop.eup %3163  ;;  %3169 = vpow2.f32 %v2757_v6 }
 0x738   :  { %1668 = vrot.lane.b32.xlu0 %v3164_v4, %s3298_s10 }
 0x73f   :  { %v3166_v63 = vpop.eup %3165 }
 0x740   :  { %1741 = vrot.lane.b32.xlu1 %v3166_v63, %s3298_s10  ;;  %v3168_v7 = vpop.eup %3167 }
 0x741   :  { %v1662_v8 = vadd.f32 1.0, %v3168_v7  ;;  %v3170_v9 = vpop.eup %3169 }
 0x742   :  { %v1735_v10 = vadd.f32 1.0, %v3170_v9 }
 0x743   :  { %3171 = vrcp.f32 %v1662_v8 }
 0x744   :  { %3173 = vrcp.f32 %v1735_v10 }
 0x74d   :  { %v3172_v11 = vpop.eup %3171 }
 0x74e   :  { %v3174_v15 = vpop.eup %3173  ;;  %v1666_v18 = vmul.f32 %v3172_v11, %v3821_v33 }
 0x74f   :  { %v1739_v21 = vmul.f32 %v3174_v15, %v3825_v40 }
 0x7aa   :  { %v1669_v12 = vpop.permute.xlu0 %1668 }
 0x7ab   :  { %v1671_v13 = vmul.f32 %v3172_v11, %v1669_v12 }
 0x7ad   :  { %1673 = vrot.lane.b32.xlu0 %v1671_v13, %s3298_s10 }
 0x7b2   :  { %v1742_v16 = vpop.permute.xlu1 %1741 }
 0x7b3   :  { %v1744_v17 = vmul.f32 %v3174_v15, %v1742_v16 }
 0x7b5   :  { %1746 = vrot.lane.b32.xlu1 %v1744_v17, %s3298_s10 }
 0x81f   :  { %v1674_v19 = vpop.permute.xlu0 %1673 }
 0x820   :  { %v3862_v20 = vadd.f32 %v1674_v19, %v1666_v18 }
 0x822   :  { %3175 = vtanh.f32 %v3862_v20 }
 0x827   :  { %v1747_v23 = vpop.permute.xlu1 %1746 }
 0x828   :  { %v3866_v24 = vadd.f32 %v1747_v23, %v1739_v21 }
 0x82a   :  { %3177 = vtanh.f32 %v3866_v24 }
 0x82c   :  { %v3176_v22 = vpop.eup %3175 }
 0x82d   :  { %1679 = vrot.lane.b32.xlu0 %v3176_v22, %s3298_s10 }
 0x834   :  { %v3178_v25 = vpop.eup %3177 }
 0x835   :  { %1752 = vrot.lane.b32.xlu1 %v3178_v25, %s3298_s10 }
 0x89f   :  { %v1680_v26 = vpop.permute.xlu0 %1679 }
 0x8a0   :  { %v3871_v27 = vmul.f32 %v3172_v11, %v1680_v26 }
 0x8a2   :  { %1761 = vrot.lane.b32.xlu1 %v3871_v27, %s3300_s5 }
 0x8a7   :  { %v1753_v28 = vpop.permute.xlu1 %1752 }
 0x8a8   :  { %v1755_v29 = vmul.f32 %v3174_v15, %v1753_v28  ;;  %v1683_v15 = vadd.f32 %v3871_v27, %v3830_v44 }
 0x8aa   :  { %1757 = vrot.lane.b32.xlu0 %v1755_v29, %s3299_s16  ;;  %v1834_v30 = vpack.c.bf16 %v1755_v29, %v1755_v29 }
 0x8ae   :  { %1836 = vrot.lane.b32.xlu0 %v1834_v30, %s3299_s16 }
 0x914   :  { %v1762_v31 = vpop.permute.xlu1 %1761 }
 0x91c   :  { %v1758_v32 = vpop.permute.xlu0 %1757 }
 0x91d   :  { %v1764_v33 = vsel %vm1360_vm5, %v1758_v32, %v1762_v31 }
 0x91e   :  { %v1765_v37 = vpack.c.bf16 %v1764_v33, %v1764_v33 }
 0x920   :  { %2972 = vmatmul.mubr.msk.bf16.vlgmr.msra.gmra.mrb[20].mxu1 %vm1465_vm6, %v1765_v37  ;;  %v1837_v39 = vpop.permute.xlu0 %1836 }
 0x921   :  { %2976 = vmatpush3.bf16.msra.mxu1 %v3546_v46  ;;  %2979 = vmatprep.mubr.msk.bf16.mxu1 %vm3296_vm2, %v3295_v3 }
 0x922   :  { %2977 = vmatprep.subr.bf16.mxu1 %v3295_v3 }
 0x925   :  { %2978 = vmatpush3.bf16.msra.mxu1 %v3553_v47 }
 0x926   :  { %3003 = vmatprep.subr.bf16.mxu1 %v3295_v3 }
 0x928   :  { %2980 = vmatmul.mubr.msk.bf16.vlgmr.msra.gmra.mrb[4].mxu1 %vm1360_vm5, %v1837_v39 }
 0x929   :  { %3004 = vmatpush3.bf16.msra.mxu1 %v3737_v34  ;;  %3011 = vmatprep.mubr.msk.bf16.mxu1 %vm3296_vm2, %v3295_v3 }
 0x92a   :  { %3005 = vmatprep.subr.bf16.mxu1 %v3295_v3 }
 0x92d   :  { %3006 = vmatpush3.bf16.msra.mxu1 %v3748_v35 }
 0x92e   :  { %3007 = vmatprep.subr.bf16.mxu1 %v3295_v3 }
 0x931   :  { %3008 = vmatpush3.bf16.msra.mxu1 %v3755_v2 }
 0x932   :  { %3009 = vmatprep.subr.bf16.mxu1 %v3295_v3 }
 0x935   :  { %3010 = vmatpush3.bf16.msra.mxu1 %v3762_v36 }
 0x936   :  { %3015 = vmatprep.subr.bf16.mxu1 %v3295_v3 }
 0x9f3   :  { %v1803_v40 = vpop.f32.mrb[20].mxu1 }
 0x9f4   :  { %v1804_v41 = vadd.f32 %v3813_v1, %v1803_v40  ;;  %v2973_v42 = vpop.f32.mrb[21].mxu1 }
 0x9f5   :  { %v1806_v43 = vpop.f32.mrb[22].mxu1 }
 0x9f6   :  { %3179 = vtanh.f32 %v1804_v41  ;;  %v2974_v45 = vpop.f32.mrb[23].mxu1  ;;  %v2759_v14 = vmul.f32 -1.442695, %v1804_v41 }
 0x9fb   :  { %v1875_v38 = vpop.f32.mrb[4].mxu1 }
 0x9fc   :  { %v3086_v48 = vadd.f32 %v3565_v50, %v1875_v38  ;;  %v2981_v51 = vpop.f32.mrb[5].mxu1 }
 0x9fd   :  { %v1878_v52 = vpop.f32.mrb[6].mxu1 }
 0x9fe   :  { %3181 = vtanh.f32 %v3086_v48  ;;  %v2982_v53 = vpop.f32.mrb[7].mxu1  ;;  %v2761_v56 = vmul.f32 -1.442695, %v3086_v48 }
 0x9ff   :  { %3183 = vpow2.f32 %v2759_v14 }
 0xa00   :  { %v3180_v54 = vpop.eup %3179  ;;  %3185 = vpow2.f32 %v2761_v56 }
 0xa01   :  { %1818 = vrot.lane.b32.xlu1 %v3180_v54, %s3298_s10 }
 0xa08   :  { %v3182_v55 = vpop.eup %3181 }
 0xa09   :  { %1891 = vrot.lane.b32.xlu0 %v3182_v55, %s3298_s10  ;;  %v3184_v57 = vpop.eup %3183 }
 0xa0a   :  { %v1812_v58 = vadd.f32 1.0, %v3184_v57  ;;  %v3186_v59 = vpop.eup %3185 }
 0xa0b   :  { %v1885_v5 = vadd.f32 1.0, %v3186_v59 }
 0xa0c   :  { %3187 = vrcp.f32 %v1812_v58 }
 0xa0d   :  { %3189 = vrcp.f32 %v1885_v5 }
 0xa16   :  { %v3188_v60 = vpop.eup %3187 }
 0xa17   :  { %v3190_v49 = vpop.eup %3189  ;;  %v1816_v0 = vmul.f32 %v3188_v60, %v3862_v20 }
 0xa18   :  { %v1889_v8 = vmul.f32 %v3190_v49, %v3866_v24 }
 0xa73   :  { %v1819_v61 = vpop.permute.xlu1 %1818 }
 0xa74   :  { %v1821_v62 = vmul.f32 %v3188_v60, %v1819_v61 }
 0xa76   :  { %1823 = vrot.lane.b32.xlu1 %v1821_v62, %s3298_s10 }
 0xa7b   :  { %v1892_v4 = vpop.permute.xlu0 %1891 }
 0xa7c   :  { %v1894_v63 = vmul.f32 %v3190_v49, %v1892_v4 }
 0xa7e   :  { %1896 = vrot.lane.b32.xlu0 %v1894_v63, %s3298_s10 }
 0xae8   :  { %v1824_v6 = vpop.permute.xlu1 %1823 }
 0xae9   :  { %v3903_v7 = vadd.f32 %v1824_v6, %v1816_v0 }
 0xaeb   :  { %3191 = vtanh.f32 %v3903_v7 }
 0xaf0   :  { %v1897_v9 = vpop.permute.xlu0 %1896 }
 0xaf1   :  { %v3907_v10 = vadd.f32 %v1897_v9, %v1889_v8  ;;  %v3965_v9 = vld [vmem:[%s4113_s3] sm:$0xff]  }
 0xaf3   :  { %3193 = vtanh.f32 %v3907_v10 }
 0xaf5   :  { %v3192_v11 = vpop.eup %3191 }
 0xaf6   :  { %1829 = vrot.lane.b32.xlu1 %v3192_v11, %s3298_s10 }
 0xafd   :  { %v3194_v12 = vpop.eup %3193 }
 0xafe   :  { %1902 = vrot.lane.b32.xlu0 %v3194_v12, %s3298_s10 }
 0xb68   :  { %v1830_v13 = vpop.permute.xlu1 %1829 }
 0xb69   :  { %v1832_v16 = vmul.f32 %v3188_v60, %v1830_v13 }
 0xb6b   :  { %v3914_v17 = vadd.f32 %v1832_v16, %v1683_v15  ;;  %1911 = vrot.lane.b32.xlu0 %v1832_v16, %s3300_s5 }
 0xb70   :  { %v1903_v18 = vpop.permute.xlu0 %1902 }
 0xb71   :  { %v1905_v19 = vmul.f32 %v3190_v49, %v1903_v18 }
 0xb73   :  { %1907 = vrot.lane.b32.xlu1 %v1905_v19, %s3299_s16  ;;  %v1984_v20 = vpack.c.bf16 %v1905_v19, %v1905_v19  ;;  %v3993_v19 = vld [vmem:[%s4112_s2] ss:$0 sm:$0xff] }
 0xb77   :  { %1986 = vrot.lane.b32.xlu1 %v1984_v20, %s3299_s16 }
 0xbdd   :  { %v1912_v21 = vpop.permute.xlu0 %1911 }
 0xbe5   :  { %v1908_v23 = vpop.permute.xlu1 %1907 }
 0xbe6   :  { %v1914_v24 = vsel %vm1360_vm5, %v1908_v23, %v1912_v21 }
 0xbe7   :  { %v1915_v22 = vpack.c.bf16 %v1914_v24, %v1914_v24 }
 0xbe9   :  { %2992 = vmatmul.mubr.msk.bf16.vlgmr.msra.gmra.mrb[20].mxu0 %vm1465_vm6, %v1915_v22  ;;  %v1987_v44 = vpop.permute.xlu1 %1986 }
 0xbea   :  { %2996 = vmatpush3.bf16.msra.mxu0 %v3546_v46  ;;  %2999 = vmatprep.mubr.msk.bf16.mxu0 %vm3296_vm2, %v3295_v3 }
 0xbeb   :  { %2997 = vmatprep.subr.bf16.mxu0 %v3295_v3 }
 0xbee   :  { %2998 = vmatpush3.bf16.msra.mxu0 %v3553_v47 }
 0xbef   :  { %3023 = vmatprep.subr.bf16.mxu0 %v3295_v3 }
 0xbf1   :  { %3000 = vmatmul.mubr.msk.bf16.vlgmr.msra.gmra.mrb[8].mxu0 %vm1360_vm5, %v1987_v44 }
 0xbf2   :  { %3024 = vmatpush3.bf16.msra.mxu0 %v3737_v34  ;;  %3031 = vmatprep.mubr.msk.bf16.mxu0 %vm3296_vm2, %v3295_v3 }
 0xbf3   :  { %3025 = vmatprep.subr.bf16.mxu0 %v3295_v3 }
 0xbf6   :  { %3026 = vmatpush3.bf16.msra.mxu0 %v3748_v35 }
 0xbf7   :  { %3027 = vmatprep.subr.bf16.mxu0 %v3295_v3 }
 0xbfa   :  { %3028 = vmatpush3.bf16.msra.mxu0 %v3755_v2 }
 0xbfb   :  { %3029 = vmatprep.subr.bf16.mxu0 %v3295_v3 }
 0xbfe   :  { %3030 = vmatpush3.bf16.msra.mxu0 %v3762_v36 }
 0xbff   :  { %3035 = vmatprep.subr.bf16.mxu0 %v3295_v3 }
 0xcbc   :  { %v1953_v46 = vpop.f32.mrb[20].mxu0 }
 0xcbd   :  { %v1954_v47 = vadd.f32 %v3813_v1, %v1953_v46  ;;  %v2993_v25 = vpop.f32.mrb[21].mxu0 }
 0xcbe   :  { %v1956_v26 = vpop.f32.mrb[22].mxu0 }
 0xcbf   :  { %3195 = vtanh.f32 %v1954_v47  ;;  %v2994_v27 = vpop.f32.mrb[23].mxu0  ;;  %v2763_v39 = vmul.f32 -1.442695, %v1954_v47 }
 0xcc4   :  { %v2025_v28 = vpop.f32.mrb[8].mxu0 }
 0xcc5   :  { %v3087_v29 = vadd.f32 %v3565_v50, %v2025_v28  ;;  %v3001_v30 = vpop.f32.mrb[9].mxu0 }
 0xcc6   :  { %v2028_v31 = vpop.f32.mrb[10].mxu0 }
 0xcc7   :  { %3197 = vtanh.f32 %v3087_v29  ;;  %v3002_v32 = vpop.f32.mrb[11].mxu0  ;;  %v2765_v40 = vmul.f32 -1.442695, %v3087_v29 }
 0xcc8   :  { %3199 = vpow2.f32 %v2763_v39 }
 0xcc9   :  { %v3196_v33 = vpop.eup %3195  ;;  %3201 = vpow2.f32 %v2765_v40 }
 0xcca   :  { %1968 = vrot.lane.b32.xlu0 %v3196_v33, %s3298_s10 }
 0xcd1   :  { %v3198_v37 = vpop.eup %3197 }
 0xcd2   :  { %2041 = vrot.lane.b32.xlu1 %v3198_v37, %s3298_s10  ;;  %v3200_v41 = vpop.eup %3199 }
 0xcd3   :  { %v1962_v42 = vadd.f32 1.0, %v3200_v41  ;;  %v3202_v43 = vpop.eup %3201 }
 0xcd4   :  { %v2035_v45 = vadd.f32 1.0, %v3202_v43 }
 0xcd5   :  { %3203 = vrcp.f32 %v1962_v42 }
 0xcd6   :  { %3205 = vrcp.f32 %v2035_v45 }
 0xcdf   :  { %v3204_v50 = vpop.eup %3203 }
 0xce0   :  { %v3206_v51 = vpop.eup %3205  ;;  %v1966_v54 = vmul.f32 %v3204_v50, %v3903_v7 }
 0xce1   :  { %v2039_v56 = vmul.f32 %v3206_v51, %v3907_v10  ;;  %v3974_v10 = vld [vmem:[%s4113_s3 + $0x8] sm:$0xff]  }
 0xd3c   :  { %v1969_v38 = vpop.permute.xlu0 %1968 }
 0xd3d   :  { %v1971_v48 = vmul.f32 %v3204_v50, %v1969_v38 }
 0xd3f   :  { %1973 = vrot.lane.b32.xlu0 %v1971_v48, %s3298_s10 }
 0xd44   :  { %v2042_v52 = vpop.permute.xlu1 %2041 }
 0xd45   :  { %v2044_v53 = vmul.f32 %v3206_v51, %v2042_v52 }
 0xd47   :  { %2046 = vrot.lane.b32.xlu1 %v2044_v53, %s3298_s10 }
 0xdb1   :  { %v1974_v55 = vpop.permute.xlu0 %1973 }
 0xdb2   :  { %v3945_v14 = vadd.f32 %v1974_v55, %v1966_v54 }
 0xdb4   :  { %3207 = vtanh.f32 %v3945_v14 }
 0xdb9   :  { %v2047_v57 = vpop.permute.xlu1 %2046 }
 0xdba   :  { %v3949_v58 = vadd.f32 %v2047_v57, %v2039_v56 }
 0xdbc   :  { %3209 = vtanh.f32 %v3949_v58 }
 0xdbe   :  { %v3208_v59 = vpop.eup %3207 }
 0xdbf   :  { %1979 = vrot.lane.b32.xlu0 %v3208_v59, %s3298_s10 }
 0xdc6   :  { %v3210_v5 = vpop.eup %3209 }
 0xdc7   :  { %2052 = vrot.lane.b32.xlu1 %v3210_v5, %s3298_s10 }
 0xe31   :  { %v1980_v60 = vpop.permute.xlu0 %1979 }
 0xe32   :  { %v1982_v61 = vmul.f32 %v3204_v50, %v1980_v60 }
 0xe34   :  { %v3955_v62 = vadd.f32 %v1982_v61, %v3914_v17  ;;  %2061 = vrot.lane.b32.xlu1 %v1982_v61, %s3300_s5 }
 0xe39   :  { %v2053_v49 = vpop.permute.xlu1 %2052 }
 0xe3a   :  { %v2055_v4 = vmul.f32 %v3206_v51, %v2053_v49 }
 0xe3c   :  { %2057 = vrot.lane.b32.xlu0 %v2055_v4, %s3299_s16  ;;  %v2134_v63 = vpack.c.bf16 %v2055_v4, %v2055_v4 }
 0xe40   :  { %2136 = vrot.lane.b32.xlu0 %v2134_v63, %s3299_s16 }
 0xea6   :  { %v2062_v0 = vpop.permute.xlu1 %2061 }
 0xeae   :  { %v2058_v6 = vpop.permute.xlu0 %2057 }
 0xeaf   :  { %v2064_v7 = vsel %vm1360_vm5, %v2058_v6, %v2062_v0 }
 0xeb0   :  { %v2065_v8 = vpack.c.bf16 %v2064_v7, %v2064_v7 }
 0xeb2   :  { %3012 = vmatmul.mubr.msk.bf16.vlgmr.msra.gmra.mrb[24].mxu1 %vm1465_vm6, %v2065_v8  ;;  %v2137_v11 = vpop.permute.xlu0 %2136 }
 0xeb3   :  { %3016 = vmatpush3.bf16.msra.mxu1 %v3965_v9  ;;  %3019 = vmatprep.mubr.msk.bf16.mxu1 %vm3296_vm2, %v3295_v3 }
 0xeb4   :  { %3017 = vmatprep.subr.bf16.mxu1 %v3295_v3 }
 0xeb7   :  { %3018 = vmatpush3.bf16.msra.mxu1 %v3974_v10 }
 0xeb8   :  { %3043 = vmatprep.subr.bf16.mxu1 %v3295_v3 }
 0xeba   :  { %3020 = vmatmul.mubr.msk.bf16.vlgmr.msra.gmra.mrb[8].mxu1 %vm1360_vm5, %v2137_v11 }
 0xebb   :  { %3044 = vmatpush3.bf16.msra.mxu1 %v3737_v34  ;;  %3051 = vmatprep.mubr.msk.bf16.mxu1 %vm3296_vm2, %v3295_v3 }
 0xebc   :  { %3045 = vmatprep.subr.bf16.mxu1 %v3295_v3 }
 0xebf   :  { %3046 = vmatpush3.bf16.msra.mxu1 %v3748_v35 }
 0xec0   :  { %3047 = vmatprep.subr.bf16.mxu1 %v3295_v3 }
 0xec3   :  { %3048 = vmatpush3.bf16.msra.mxu1 %v3755_v2 }
 0xec4   :  { %3049 = vmatprep.subr.bf16.mxu1 %v3295_v3 }
 0xec7   :  { %3050 = vmatpush3.bf16.msra.mxu1 %v3762_v36 }
 0xec8   :  { %3055 = vmatprep.subr.bf16.mxu1 %v3295_v3 }
 0xf85   :  { %v2103_v12 = vpop.f32.mrb[24].mxu1 }
 0xf86   :  { %v2104_v13 = vadd.f32 %v3813_v1, %v2103_v12  ;;  %v3013_v15 = vpop.f32.mrb[25].mxu1 }
 0xf87   :  { %v2106_v16 = vpop.f32.mrb[26].mxu1 }
 0xf88   :  { %3211 = vtanh.f32 %v2104_v13  ;;  %v3014_v17 = vpop.f32.mrb[27].mxu1  ;;  %v2767_v46 = vmul.f32 -1.442695, %v2104_v13 }
 0xf8d   :  { %v2175_v18 = vpop.f32.mrb[8].mxu1 }
 0xf8e   :  { %v3088_v20 = vadd.f32 %v3993_v19, %v2175_v18  ;;  %v3021_v21 = vpop.f32.mrb[9].mxu1 }
 0xf8f   :  { %v2178_v23 = vpop.f32.mrb[10].mxu1 }
 0xf90   :  { %3213 = vtanh.f32 %v3088_v20  ;;  %v3022_v24 = vpop.f32.mrb[11].mxu1  ;;  %v2769_v47 = vmul.f32 -1.442695, %v3088_v20 }
 0xf91   :  { %3215 = vpow2.f32 %v2767_v46 }
 0xf92   :  { %v3212_v22 = vpop.eup %3211  ;;  %3217 = vpow2.f32 %v2769_v47 }
 0xf93   :  { %2118 = vrot.lane.b32.xlu1 %v3212_v22, %s3298_s10 }
 0xf9a   :  { %v3214_v44 = vpop.eup %3213 }
 0xf9b   :  { %2191 = vrot.lane.b32.xlu0 %v3214_v44, %s3298_s10  ;;  %v3216_v25 = vpop.eup %3215 }
 0xf9c   :  { %v2112_v26 = vadd.f32 1.0, %v3216_v25  ;;  %v3218_v27 = vpop.eup %3217 }
 0xf9d   :  { %v2185_v28 = vadd.f32 1.0, %v3218_v27 }
 0xf9e   :  { %3219 = vrcp.f32 %v2112_v26 }
 0xf9f   :  { %3221 = vrcp.f32 %v2185_v28 }
 0xfa8   :  { %v3220_v29 = vpop.eup %3219 }
 0xfa9   :  { %v3222_v32 = vpop.eup %3221  ;;  %v2116_v39 = vmul.f32 %v3220_v29, %v3945_v14 }
 0xfaa   :  { %v2189_v42 = vmul.f32 %v3222_v32, %v3949_v58 }
0x1005   :  { %v2119_v30 = vpop.permute.xlu1 %2118 }
0x1006   :  { %v2121_v31 = vmul.f32 %v3220_v29, %v2119_v30 }
0x1008   :  { %2123 = vrot.lane.b32.xlu1 %v2121_v31, %s3298_s10 }
0x100d   :  { %v2192_v33 = vpop.permute.xlu0 %2191 }
0x100e   :  { %v2194_v37 = vmul.f32 %v3222_v32, %v2192_v33 }
0x1010   :  { %2196 = vrot.lane.b32.xlu0 %v2194_v37, %s3298_s10 }
0x107a   :  { %v2124_v40 = vpop.permute.xlu1 %2123 }
0x107b   :  { %v4001_v41 = vadd.f32 %v2124_v40, %v2116_v39 }
0x107d   :  { %3223 = vtanh.f32 %v4001_v41 }
0x1082   :  { %v2197_v43 = vpop.permute.xlu0 %2196 }
0x1083   :  { %v4005_v45 = vadd.f32 %v2197_v43, %v2189_v42 }
0x1085   :  { %3225 = vtanh.f32 %v4005_v45 }
0x1087   :  { %v3224_v50 = vpop.eup %3223 }
0x1088   :  { %2129 = vrot.lane.b32.xlu1 %v3224_v50, %s3298_s10 }
0x108f   :  { %v3226_v38 = vpop.eup %3225 }
0x1090   :  { %2202 = vrot.lane.b32.xlu0 %v3226_v38, %s3298_s10 }
0x10fa   :  { %v2130_v48 = vpop.permute.xlu1 %2129 }
0x10fb   :  { %v2132_v51 = vmul.f32 %v3220_v29, %v2130_v48 }
0x10fd   :  { %v4011_v52 = vadd.f32 %v2132_v51, %v3955_v62  ;;  %2211 = vrot.lane.b32.xlu0 %v2132_v51, %s3300_s5 }
0x1102   :  { %v2203_v53 = vpop.permute.xlu0 %2202 }
0x1103   :  { %v2205_v54 = vmul.f32 %v3222_v32, %v2203_v53 }
0x1105   :  { %2207 = vrot.lane.b32.xlu1 %v2205_v54, %s3299_s16  ;;  %v2284_v55 = vpack.c.bf16 %v2205_v54, %v2205_v54 }
0x1109   :  { %2286 = vrot.lane.b32.xlu1 %v2284_v55, %s3299_s16 }
0x116f   :  { %v2212_v14 = vpop.permute.xlu0 %2211 }
0x1177   :  { %v2208_v56 = vpop.permute.xlu1 %2207 }
0x1178   :  { %v2214_v57 = vsel %vm1360_vm5, %v2208_v56, %v2212_v14 }
0x1179   :  { %v2215_v58 = vpack.c.bf16 %v2214_v57, %v2214_v57 }
0x117b   :  { %3032 = vmatmul.mubr.msk.bf16.vlgmr.msra.gmra.mrb[24].mxu0 %vm1465_vm6, %v2215_v58  ;;  %v2287_v59 = vpop.permute.xlu1 %2286 }
0x117c   :  { %3036 = vmatpush3.bf16.msra.mxu0 %v3965_v9  ;;  %3039 = vmatprep.mubr.msk.bf16.mxu0 %vm3296_vm2, %v3295_v3 }
0x117d   :  { %3037 = vmatprep.subr.bf16.mxu0 %v3295_v3 }
0x1180   :  { %3038 = vmatpush3.bf16.msra.mxu0 %v3974_v10 }
0x1181   :  { %3063 = vmatprep.subr.bf16.mxu0 %v3295_v3 }
0x1183   :  { %3040 = vmatmul.mubr.msk.bf16.vlgmr.msra.gmra.mrb[12].mxu0 %vm1360_vm5, %v2287_v59 }
0x1184   :  { %3064 = vmatpush3.bf16.msra.mxu0 %v3737_v34  ;;  %3071 = vmatprep.mubr.msk.bf16.mxu0 %vm3296_vm2, %v3295_v3 }
0x1185   :  { %3065 = vmatprep.subr.bf16.mxu0 %v3295_v3 }
0x1188   :  { %3066 = vmatpush3.bf16.msra.mxu0 %v3748_v35 }
0x1189   :  { %3067 = vmatprep.subr.bf16.mxu0 %v3295_v3 }
0x118c   :  { %3068 = vmatpush3.bf16.msra.mxu0 %v3755_v2 }
0x118d   :  { %3069 = vmatprep.subr.bf16.mxu0 %v3295_v3 }
0x1190   :  { %3070 = vmatpush3.bf16.msra.mxu0 %v3762_v36 }
0x1191   :  { %3075 = vmatprep.subr.bf16.mxu0 %v3295_v3 }
0x124e   :  { %v2253_v5 = vpop.f32.mrb[24].mxu0 }
0x124f   :  { %v2254_v34 = vadd.f32 %v3813_v1, %v2253_v5  ;;  %v3033_v60 = vpop.f32.mrb[25].mxu0 }
0x1250   :  { %v2256_v61 = vpop.f32.mrb[26].mxu0 }
0x1251   :  { %3227 = vtanh.f32 %v2254_v34  ;;  %v3034_v62 = vpop.f32.mrb[27].mxu0  ;;  %v2771_v6 = vmul.f32 -1.442695, %v2254_v34 }
0x1256   :  { %v2325_v49 = vpop.f32.mrb[12].mxu0 }
0x1257   :  { %v3089_v35 = vadd.f32 %v3993_v19, %v2325_v49  ;;  %v3041_v4 = vpop.f32.mrb[13].mxu0 }
0x1258   :  { %v2328_v63 = vpop.f32.mrb[14].mxu0 }
0x1259   :  { %3229 = vtanh.f32 %v3089_v35  ;;  %v3042_v2 = vpop.f32.mrb[15].mxu0  ;;  %v2773_v7 = vmul.f32 -1.442695, %v3089_v35 }
0x125a   :  { %3231 = vpow2.f32 %v2771_v6 }
0x125b   :  { %v3228_v0 = vpop.eup %3227  ;;  %3233 = vpow2.f32 %v2773_v7 }
0x125c   :  { %2268 = vrot.lane.b32.xlu0 %v3228_v0, %s3298_s10 }
0x1263   :  { %v3230_v36 = vpop.eup %3229 }
0x1264   :  { %2341 = vrot.lane.b32.xlu1 %v3230_v36, %s3298_s10  ;;  %v3232_v8 = vpop.eup %3231 }
0x1265   :  { %v2262_v11 = vadd.f32 1.0, %v3232_v8  ;;  %v3234_v12 = vpop.eup %3233 }
0x1266   :  { %v2335_v13 = vadd.f32 1.0, %v3234_v12 }
0x1267   :  { %3235 = vrcp.f32 %v2262_v11 }
0x1268   :  { %3237 = vrcp.f32 %v2335_v13 }
0x1271   :  { %v3236_v15 = vpop.eup %3235 }
0x1272   :  { %v3238_v18 = vpop.eup %3237  ;;  %v2266_v23 = vmul.f32 %v3236_v15, %v4001_v41 }
0x1273   :  { %v2339_v44 = vmul.f32 %v3238_v18, %v4005_v45 }
0x12ce   :  { %v2269_v16 = vpop.permute.xlu0 %2268 }
0x12cf   :  { %v2271_v17 = vmul.f32 %v3236_v15, %v2269_v16 }
0x12d1   :  { %2273 = vrot.lane.b32.xlu0 %v2271_v17, %s3298_s10 }
0x12d6   :  { %v2342_v20 = vpop.permute.xlu1 %2341 }
0x12d7   :  { %v2344_v21 = vmul.f32 %v3238_v18, %v2342_v20 }
0x12d9   :  { %2346 = vrot.lane.b32.xlu1 %v2344_v21, %s3298_s10 }
0x1343   :  { %v2274_v24 = vpop.permute.xlu0 %2273 }
0x1344   :  { %v4042_v22 = vadd.f32 %v2274_v24, %v2266_v23 }
0x1346   :  { %3239 = vtanh.f32 %v4042_v22 }
0x134b   :  { %v2347_v46 = vpop.permute.xlu1 %2346 }
0x134c   :  { %v4046_v47 = vadd.f32 %v2347_v46, %v2339_v44 }
0x134e   :  { %3241 = vtanh.f32 %v4046_v47 }
0x1350   :  { %v3240_v25 = vpop.eup %3239 }
0x1351   :  { %2279 = vrot.lane.b32.xlu0 %v3240_v25, %s3298_s10 }
0x1358   :  { %v3242_v26 = vpop.eup %3241 }
0x1359   :  { %2352 = vrot.lane.b32.xlu1 %v3242_v26, %s3298_s10 }
0x13c3   :  { %v2280_v27 = vpop.permute.xlu0 %2279 }
0x13c4   :  { %v2282_v28 = vmul.f32 %v3236_v15, %v2280_v27 }
0x13c6   :  { %v4052_v29 = vadd.f32 %v2282_v28, %v4011_v52  ;;  %2361 = vrot.lane.b32.xlu1 %v2282_v28, %s3300_s5 }
0x13cb   :  { %v2353_v30 = vpop.permute.xlu1 %2352 }
0x13cc   :  { %v2355_v31 = vmul.f32 %v3238_v18, %v2353_v30 }
0x13ce   :  { %2357 = vrot.lane.b32.xlu0 %v2355_v31, %s3299_s16  ;;  %v2434_v32 = vpack.c.bf16 %v2355_v31, %v2355_v31  ;;  %v3137_v31 = vld [vmem:[%s4116_s6] sm:$0xff]  }
0x13d2   :  { %2436 = vrot.lane.b32.xlu0 %v2434_v32, %s3299_s16  ;;  %v3138_v32 = vld [vmem:[%s4116_s6 + $0x8] sm:$0xff]   ;;  %s3301_s6 = smov [#allocation2]  }
0x13d3   :  { %s2662_s27 = sshll.u32 %s3301_s6, 4  ;;  %s2663_s27 = int_to_ptr.vmem [resolvable:$true] %s2662_s27 }
0x13d4   :  { %p3275_p1 = scmp.lt.s32.totalorder %s2663_s27, %s2663_s27 }
0x1438   :  { %v2362_v33 = vpop.permute.xlu1 %2361 }
0x1440   :  { %v2358_v37 = vpop.permute.xlu0 %2357 }
0x1441   :  { %v2364_v39 = vsel %vm1360_vm5, %v2358_v37, %v2362_v33 }
0x1442   :  { %v2365_v40 = vpack.c.bf16 %v2364_v39, %v2364_v39 }
0x1444   :  { %3052 = vmatmul.mubr.msk.bf16.vlgmr.msra.gmra.mrb[28].mxu1 %vm1465_vm6, %v2365_v40  ;;  %v2437_v41 = vpop.permute.xlu0 %2436 }
0x1445   :  { %3056 = vmatpush3.bf16.msra.mxu1 %v3965_v9  ;;  %3059 = vmatprep.mubr.msk.bf16.mxu1 %vm3296_vm2, %v3295_v3 }
0x1446   :  { %3057 = vmatprep.subr.bf16.mxu1 %v3295_v3 }
0x1449   :  { %3058 = vmatpush3.bf16.msra.mxu1 %v3974_v10 }
0x144c   :  { %3060 = vmatmul.mubr.msk.bf16.vlgmr.msra.gmra.mrb[12].mxu1 %vm1360_vm5, %v2437_v41 }
0x1517   :  { %v2403_v42 = vpop.f32.mrb[28].mxu1 }
0x1518   :  { %v2404_v43 = vadd.f32 %v3813_v1, %v2403_v42  ;;  %v3053_v45 = vpop.f32.mrb[29].mxu1 }
0x1519   :  { %v2406_v50 = vpop.f32.mrb[30].mxu1 }
0x151a   :  { %3243 = vtanh.f32 %v2404_v43  ;;  %v3054_v38 = vpop.f32.mrb[31].mxu1  ;;  %v2775_v55 = vmul.f32 -1.442695, %v2404_v43  ;;  %v2780_v43 = vld [vmem:[%s4117_s7] ss:$0 sm:$0xff] }
0x151f   :  { %v2475_v48 = vpop.f32.mrb[12].mxu1 }
0x1520   :  { %v3090_v9 = vadd.f32 %v3993_v19, %v2475_v48  ;;  %v3061_v51 = vpop.f32.mrb[13].mxu1 }
0x1521   :  { %v2478_v52 = vpop.f32.mrb[14].mxu1 }
0x1522   :  { %3245 = vtanh.f32 %v3090_v9  ;;  %v3062_v53 = vpop.f32.mrb[15].mxu1  ;;  %v2777_v14 = vmul.f32 -1.442695, %v3090_v9 }
0x1523   :  { %3247 = vpow2.f32 %v2775_v55 }
0x1524   :  { %v3244_v54 = vpop.eup %3243  ;;  %3249 = vpow2.f32 %v2777_v14 }
0x1525   :  { %2418 = vrot.lane.b32.xlu1 %v3244_v54, %s3298_s10 }
0x152c   :  { %v3246_v10 = vpop.eup %3245 }
0x152d   :  { %2491 = vrot.lane.b32.xlu0 %v3246_v10, %s3298_s10  ;;  %v3248_v56 = vpop.eup %3247 }
0x152e   :  { %v2412_v57 = vadd.f32 1.0, %v3248_v56  ;;  %v3250_v58 = vpop.eup %3249 }
0x152f   :  { %v2485_v59 = vadd.f32 1.0, %v3250_v58 }
0x1530   :  { %3251 = vrcp.f32 %v2412_v57 }
0x1531   :  { %3253 = vrcp.f32 %v2485_v59 }
0x153a   :  { %v3252_v19 = vpop.eup %3251 }
0x153b   :  { %v3254_v60 = vpop.eup %3253  ;;  %v2416_v49 = vmul.f32 %v3252_v19, %v4042_v22 }
0x153c   :  { %v2489_v63 = vmul.f32 %v3254_v60, %v4046_v47 }
0x1597   :  { %v2419_v5 = vpop.permute.xlu1 %2418 }
0x1598   :  { %v2421_v34 = vmul.f32 %v3252_v19, %v2419_v5 }
0x159a   :  { %2423 = vrot.lane.b32.xlu1 %v2421_v34, %s3298_s10 }
0x159f   :  { %v2492_v61 = vpop.permute.xlu0 %2491 }
0x15a0   :  { %v2494_v62 = vmul.f32 %v3254_v60, %v2492_v61 }
0x15a2   :  { %2496 = vrot.lane.b32.xlu0 %v2494_v62, %s3298_s10 }
0x160c   :  { %v2424_v35 = vpop.permute.xlu1 %2423 }
0x160d   :  { %v2426_v4 = vadd.f32 %v2424_v35, %v2416_v49 }
0x160f   :  { %3255 = vtanh.f32 %v2426_v4 }
0x1614   :  { %v2497_v2 = vpop.permute.xlu0 %2496 }
0x1615   :  { %v2499_v0 = vadd.f32 %v2497_v2, %v2489_v63 }
0x1617   :  { %3257 = vtanh.f32 %v2499_v0 }
0x1619   :  { %v3256_v36 = vpop.eup %3255 }
0x161a   :  { %2429 = vrot.lane.b32.xlu1 %v3256_v36, %s3298_s10 }
0x1621   :  { %v3258_v6 = vpop.eup %3257 }
0x1622   :  { %2502 = vrot.lane.b32.xlu0 %v3258_v6, %s3298_s10 }
0x168c   :  { %v2430_v7 = vpop.permute.xlu1 %2429 }
0x168d   :  { %v2432_v8 = vmul.f32 %v3252_v19, %v2430_v7 }
0x168f   :  { %v2433_v11 = vadd.f32 %v2432_v8, %v4052_v29  ;;  %2511 = vrot.lane.b32.xlu0 %v2432_v8, %s3300_s5 }
0x1694   :  { %v2503_v12 = vpop.permute.xlu0 %2502 }
0x1695   :  { %v2505_v13 = vmul.f32 %v3254_v60, %v2503_v12 }
0x1697   :  { %2507 = vrot.lane.b32.xlu1 %v2505_v13, %s3299_s16 }
0x1701   :  { %v2512_v15 = vpop.permute.xlu0 %2511 }
0x1709   :  { %v2508_v16 = vpop.permute.xlu1 %2507 }
0x170a   :  { %v2514_v17 = vsel %vm1360_vm5, %v2508_v16, %v2512_v15 }
0x170b   :  { %v2515_v18 = vpack.c.bf16 %v2514_v17, %v2514_v17 }
0x170d   :  { %3072 = vmatmul.mubr.msk.bf16.vlgmr.msra.gmra.mrb[28].mxu0 %vm1465_vm6, %v2515_v18 }
0x170e   :  { %3079 = vmatprep.mubr.msk.bf16.mxu0 %vm3296_vm2, %v3295_v3  ;;  %3076 = vmatpush3.bf16.msra.mxu0 %v3137_v31 }
0x170f   :  { %3077 = vmatprep.subr.bf16.mxu0 %v3295_v3 }
0x1712   :  { %3078 = vmatpush3.bf16.msra.mxu0 %v3138_v32 }
0x17e0   :  { %v2553_v20 = vpop.f32.mrb[28].mxu0 }
0x17e1   :  { %v2554_v21 = vadd.f32 %v3813_v1, %v2553_v20  ;;  %v3073_v23 = vpop.f32.mrb[29].mxu0 }
0x17e2   :  { %v2556_v24 = vpop.f32.mrb[30].mxu0 }
0x17e3   :  { %3259 = vtanh.f32 %v2554_v21  ;;  %v3074_v22 = vpop.f32.mrb[31].mxu0  ;;  %v2779_v46 = vmul.f32 -1.442695, %v2554_v21 }
0x17e5   :  { %3261 = vpow2.f32 %v2779_v46 }
0x17ed   :  { %v3260_v44 = vpop.eup %3259 }
0x17ee   :  { %2568 = vrot.lane.b32.xlu1 %v3260_v44, %s3298_s10 }
0x17ef   :  { %v3262_v47 = vpop.eup %3261 }
0x17f0   :  { %v2562_v25 = vadd.f32 1.0, %v3262_v47 }
0x17f2   :  { %3263 = vrcp.f32 %v2562_v25 }
0x17fc   :  { %v3264_v26 = vpop.eup %3263 }
0x17fd   :  { %v2566_v29 = vmul.f32 %v3264_v26, %v2426_v4 }
0x1860   :  { %v2569_v27 = vpop.permute.xlu1 %2568 }
0x1861   :  { %v2571_v28 = vmul.f32 %v3264_v26, %v2569_v27 }
0x1863   :  { %2573 = vrot.lane.b32.xlu0 %v2571_v28, %s3298_s10 }
0x18d5   :  { %v2574_v30 = vpop.permute.xlu0 %2573 }
0x18d6   :  { %v2576_v1 = vadd.f32 %v2574_v30, %v2566_v29 }
0x18d8   :  { %3265 = vtanh.f32 %v2576_v1 }
0x18e2   :  { %v3266_v33 = vpop.eup %3265 }
0x18e3   :  { %2579 = vrot.lane.b32.xlu1 %v3266_v33, %s3298_s10  ;;  %s3270_s10 = scalar_lea.vmem %s2663_s27, 32 }
0x18e4   :  { %p3271_p0 = scmp.ne.s32.totalorder %s2663_s27, %s3270_s10  ;;  %p3276_p2 = scmp.lt.s32.totalorder %s3270_s10, %s3270_s10 }
0x18e6   :  { %p3277_p3 = por %p3276_p2, %p3275_p1 }
0x18e8   :  { %p3278_p4 = pnand %p3277_p3, %p3271_p0 }
0x1955   :  { %v2580_v37 = vpop.permute.xlu1 %2579 }
0x1956   :  { %v2582_v39 = vmul.f32 %v3264_v26, %v2580_v37 }
0x1958   :  { %v2583_v40 = vadd.f32 %v2582_v39, %v2433_v11 }
0x195a   :  { %v2584_v41 = vpack.c.bf16 %v2583_v40, %v2583_v40 }
0x195c   :  { %2597 = vrot.lane.b32.xlu0 %v2584_v41, %s3299_s16 }
0x19ce   :  { %v2598_v42 = vpop.permute.xlu0 %2597 }
0x19cf   :  { %3080 = vmatmul.mubr.msk.bf16.vlgmr.msra.gmra.mrb[32].mxu0 %vm1360_vm5, %v2598_v42 }
0x1aa2   :  { %v2648_v3 = vpop.f32.mrb[32].mxu0 }
0x1aa3   :  { %v2649_v45 = vadd.f32 %v2780_v43, %v2648_v3  ;;  %v3081_v50 = vpop.f32.mrb[33].mxu0 }
0x1aa4   :  { %v2651_v38 = vpop.f32.mrb[34].mxu0 }
0x1aa5   :  { %v3082_v48 = vpop.f32.mrb[35].mxu0  ;;  %2655 = vst.msk [vmem:[#allocation2] sm:$0x3] %vm2654_vm7, %v2649_v45 }
0x1aa6   :  { %3281 = shalt.err (!%p3278_p4)
}
0x1aa7   :  { %s3282_s7 = scalar_lea.hbm %s4118_s8, 32 }
0x1aa8   :  { %p3283_p5 = scmp.ne.s32.totalorder %s4118_s8, %s3282_s7  ;;  %p3286_p6 = scmp.lt.u32.totalorder %s3282_s7, %s4118_s8 }
0x1aaa   :  { %p3288_p7 = pnand %p3286_p6, %p3283_p5 }
0x1aac   :  { %3291 = shalt.err (!%p3288_p7)
}
0x1aad   :  { %2665 = dma.vmem_to_hbm [thread:$0]  %s2663_s27, 32, %s4118_s8, [#allocation3]  }
0x1aae   :  { %3292 = dma.done.wait [#allocation3], 32  }
0x1aaf   :  { %3293 = vsyncadd [#allocation3], 4294967264 }
0x1ab0   :  { %2669 = vsyncpa [#allocation3], 1 }

</bundles_post_ra>
